<compile_context>
chip_gen: v5e
topology: v5e:2x2
jax: 0.10.0
libtpu: 0.0.40
codegen_flags: <defaults>
</compile_context>

<pallas_src>
import math
from functools import partial

import jax
import jax.numpy as jnp
from jax.experimental import pallas as pl
from jax.experimental.pallas import tpu as pltpu


# ----------------------------------------------------------------------------
# Tiling constants
# ----------------------------------------------------------------------------
TM_MAX = 256   # output rows per grid tile (sweepable: 128 / 256 / 512)
TN = 128       # output cols per grid tile (lane-dense multiple of 128)
CK = 128       # K columns per grid step (statically unrolled inside the kernel)
SM = 64        # rows per in-kernel sub-block (vreg-resident accumulator)


def _round_up(x, m):
    return ((x + m - 1) // m) * m


# ----------------------------------------------------------------------------
# Pallas kernel: tiled l-infinity distance  D[m, n] = max_k |X[m,k] - W[n,k]|
# ----------------------------------------------------------------------------
def _linf_dist_kernel(x_ref, wt_ref, o_ref):
    # x_ref : (tm, ck)  rows m on sublanes, k on lanes
    # wt_ref: (ck, tn)  k on sublanes, n on lanes  (weights pre-transposed)
    # o_ref : (tm, tn)  resident accumulator across the K grid axis
    @pl.when(pl.program_id(2) == 0)
    def _():
        o_ref[...] = jnp.zeros_like(o_ref)          # distances are >= 0

    tm, ck = x_ref.shape
    for m0 in range(0, tm, SM):                     # static row sub-blocking
        cur = min(SM, tm - m0)
        acc = o_ref[m0:m0 + cur, :]                 # (cur, tn) running max
        for j in range(ck):                         # static unroll over K slab
            xcol = x_ref[m0:m0 + cur, j:j + 1]      # (cur, 1) -> lane broadcast
            wrow = wt_ref[j:j + 1, :]               # (1, tn) -> sublane broadcast
            acc = jnp.maximum(acc, jnp.abs(xcol - wrow))
        o_ref[m0:m0 + cur, :] = acc


def linf_dist(x, wt_p, n_out):
    """D[m, n] = max_k |x[m, k] - w[n, k]|.

    x    : (M, K) activations / im2col patches (unpadded).
    wt_p : (Kp, Np) weights, already transposed to K-major and zero-padded
           to tile multiples (done once at parameter-prep time).
    Returns (M, n_out) float32.
    """
    M, K = x.shape
    Kp, Np = wt_p.shape
    assert K <= Kp and Np % TN == 0

    x = x.astype(jnp.float32)
    tm = min(TM_MAX, _round_up(M, 8))
    Mp = _round_up(M, tm)
    if (Mp, Kp) != (M, K):
        # Zero padding is exact: |0 - 0| = 0 never raises a max of >= 0 values,
        # and padded rows/cols are sliced away below.
        x = jnp.pad(x, ((0, Mp - M), (0, Kp - K)))

    ck = Kp if Kp < CK else CK                      # K slab per grid step
    assert Kp % ck == 0

    out = pl.pallas_call(
        _linf_dist_kernel,
        out_shape=jax.ShapeDtypeStruct((Mp, Np), jnp.float32),
        grid_spec=pltpu.PrefetchScalarGridSpec(
            num_scalar_prefetch=0,
            grid=(Mp // tm, Np // TN, Kp // ck),
            in_specs=[pl.BlockSpec((tm, ck), lambda i, j, k: (i, k)),
                      pl.BlockSpec((ck, TN), lambda i, j, k: (k, j))],
            out_specs=pl.BlockSpec((tm, TN), lambda i, j, k: (i, j))),
        compiler_params=pltpu.CompilerParams(
            dimension_semantics=("parallel", "parallel", "arbitrary")),
    )(x, wt_p)
    return out[:M, :n_out]


# ----------------------------------------------------------------------------
# One-time weight preparation (hoisted out of the forward path)
# ----------------------------------------------------------------------------
def prep_normdist_weight(w):
    """Flatten (conv/linear) weight to (N, K), transpose to (K, N), zero-pad
    to TPU tile multiples.  Conv weights use (kh, kw, Cin) K-ordering to match
    the NHWC im2col patches."""
    if w.ndim == 4:
        cout, cin, kh, kw = w.shape
        w2 = jnp.transpose(w, (0, 2, 3, 1)).reshape(cout, kh * kw * cin)
    else:
        kh = kw = 1
        w2 = w
    n, k = w2.shape
    kp = _round_up(k, CK) if k >= CK else _round_up(k, 8)
    np_pad = _round_up(n, TN)
    wt = jnp.pad(jnp.transpose(w2.astype(jnp.float32)),
                 ((0, kp - k), (0, np_pad - n)))
    return {'wt': wt, 'n': int(n), 'k': int(k), 'kh': int(kh), 'kw': int(kw)}


# ----------------------------------------------------------------------------
# NormDistConv / NormDist wrappers (NHWC, im2col + Pallas distance + mean-norm)
# ----------------------------------------------------------------------------
def _im2col_nhwc(x, kh, kw, stride, padding):
    """x: (B, H, W, C) -> patches (B*Ho*Wo, kh*kw*C) with (kh, kw, C) K-order."""
    B, H, W, C = x.shape
    if kh == 1 and kw == 1 and padding == 0:        # fast path for 1x1 convs
        xs = x[:, ::stride, ::stride, :] if stride != 1 else x
        _, Ho, Wo, _ = xs.shape
        return xs.reshape(B * Ho * Wo, C), Ho, Wo
    xp = jnp.pad(x, ((0, 0), (padding, padding), (padding, padding), (0, 0)))
    Ho = (H + 2 * padding - kh) // stride + 1
    Wo = (W + 2 * padding - kw) // stride + 1
    cols = []
    for i in range(kh):
        for j in range(kw):
            cols.append(xp[:, i:i + stride * Ho:stride,
                           j:j + stride * Wo:stride, :])
    col = jnp.stack(cols, axis=3)                   # (B, Ho, Wo, kh*kw, C)
    return col.reshape(B * Ho * Wo, kh * kw * C), Ho, Wo
    # TODO(synk): the im2col gather could be folded into the Pallas kernel via
    # overlapping-window BlockSpecs to avoid materializing the patches matrix.


@partial(jax.jit,
         static_argnames=("kh", "kw", "n_out", "stride", "padding", "mean_normalize"))
def _normdist_conv_impl(x, wt, *, kh, kw, n_out, stride, padding, mean_normalize):
    B = x.shape[0]
    patches, Ho, Wo = _im2col_nhwc(x, kh, kw, stride, padding)
    d = linf_dist(patches, wt, n_out)               # (B*Ho*Wo, Cout)
    if mean_normalize:
        # per-(sample, spatial position) channel mean; Cout is the lane axis
        d = d - jnp.mean(d, axis=1, keepdims=True)
    return d.reshape(B, Ho, Wo, n_out)              # stay NHWC (no transposes)


def normdist_conv(x, wp, *, stride, padding, mean_normalize):
    return _normdist_conv_impl(x, wp['wt'], kh=wp['kh'], kw=wp['kw'],
                               n_out=wp['n'], stride=stride, padding=padding,
                               mean_normalize=mean_normalize)


@partial(jax.jit, static_argnames=("n_out", "mean_normalize"))
def _normdist_linear_impl(x, wt, *, n_out, mean_normalize):
    d = linf_dist(x, wt, n_out)
    if mean_normalize:
        d = d - jnp.mean(d, axis=1, keepdims=True)
    return d


def normdist_linear(x, wp, *, mean_normalize):
    return _normdist_linear_impl(x, wp['wt'], n_out=wp['n'],
                                 mean_normalize=mean_normalize)


# ----------------------------------------------------------------------------
# Parameters (deterministic, kaiming_normal fan_out / relu as in the module)
# ----------------------------------------------------------------------------
_MODEL_CFG = {
    'resnet18': ('basic', [2, 2, 2, 2], 512),
    'resnet34': ('basic', [3, 4, 6, 3], 512),
    'resnet50': ('bottleneck', [3, 4, 6, 3], 2048),
    'resnet101': ('bottleneck', [3, 4, 23, 3], 2048),
}


def _kaiming_conv(key, cout, cin, k):
    fan_out = cout * k * k
    return math.sqrt(2.0 / fan_out) * jax.random.normal(key, (cout, cin, k, k),
                                                        jnp.float32)


def _head_lin(key, out_f, in_f):
    return math.sqrt(2.0 / out_f) * jax.random.normal(key, (out_f, in_f),
                                                      jnp.float32)


def make_resnet_params(key, name='resnet50', feat_dim=512, num_classes=10,
                       in_channel=3):
    btype, num_blocks, dim_in = _MODEL_CFG[name]
    expansion = 4 if btype == 'bottleneck' else 1
    ki = iter(jax.random.split(key, 512))
    params = {'btype': btype}
    params['conv'] = prep_normdist_weight(_kaiming_conv(next(ki), 64, in_channel, 3))
    in_planes = 64
    layers = []
    for planes, nb, stride0 in zip([64, 128, 256, 512], num_blocks, [1, 2, 2, 2]):
        blocks = []
        for bi in range(nb):
            stride = stride0 if bi == 0 else 1
            bp = {'stride': stride}
            if btype == 'bottleneck':
                bp['conv1'] = prep_normdist_weight(_kaiming_conv(next(ki), planes, in_planes, 1))
                bp['conv2'] = prep_normdist_weight(_kaiming_conv(next(ki), planes, planes, 3))
                bp['conv3'] = prep_normdist_weight(_kaiming_conv(next(ki), expansion * planes, planes, 1))
            else:
                bp['conv1'] = prep_normdist_weight(_kaiming_conv(next(ki), planes, in_planes, 3))
                bp['conv2'] = prep_normdist_weight(_kaiming_conv(next(ki), planes, planes, 3))
            if stride != 1 or in_planes != expansion * planes:
                bp['shortcut'] = prep_normdist_weight(
                    _kaiming_conv(next(ki), expansion * planes, in_planes, 1))
            blocks.append(bp)
            in_planes = planes * expansion
        layers.append(blocks)
    params['layers'] = layers
    params['head'] = [
        {'w': prep_normdist_weight(_head_lin(next(ki), dim_in, dim_in)),
         'mean_norm': True, 'b': None},
        {'w': prep_normdist_weight(_head_lin(next(ki), feat_dim, dim_in)),
         'mean_norm': True, 'b': None},
        {'w': prep_normdist_weight(_head_lin(next(ki), num_classes, feat_dim)),
         'mean_norm': False, 'b': jnp.zeros((num_classes,), jnp.float32)},
    ]
    return params


# ----------------------------------------------------------------------------
# Forward pass (BasicBlock / Bottleneck / encoder / head) — NHWC internally
# ----------------------------------------------------------------------------
def _block_forward(x, bp, btype):
    s = bp['stride']
    if btype == 'bottleneck':
        out = normdist_conv(x, bp['conv1'], stride=1, padding=0, mean_normalize=True)
        out = normdist_conv(out, bp['conv2'], stride=s, padding=1, mean_normalize=True)
        out = normdist_conv(out, bp['conv3'], stride=1, padding=0, mean_normalize=True)
    else:  # BasicBlock
        out = normdist_conv(x, bp['conv1'], stride=s, padding=1, mean_normalize=True)
        out = normdist_conv(out, bp['conv2'], stride=1, padding=1, mean_normalize=True)
    sc = x
    if 'shortcut' in bp:
        sc = normdist_conv(x, bp['shortcut'], stride=s, padding=0, mean_normalize=True)
    # lower/upper bounds are None in this forward -> (mix, None, None)
    return out * 0.8 + sc * 0.2


def resnet_forward(params, x, lower=None, upper=None):
    """ResNet.forward: encoder -> avgpool/flatten -> NormDist head -> negate."""
    # TODO(synk): interval-bound (lower/upper) propagation through NormDist
    # layers is not implemented; the reference forward is called with
    # lower=upper=None, so the bound path stays None.
    y = jnp.transpose(x, (0, 2, 3, 1))          # NCHW -> NHWC once at the boundary
    y = normdist_conv(y, params['conv'], stride=1, padding=1, mean_normalize=True)
    for blocks in params['layers']:
        for bp in blocks:
            y = _block_forward(y, bp, params['btype'])
    y = jnp.mean(y, axis=(1, 2))                # BoundAdaptiveAvgPool2d((1,1)) + view
    for hp in params['head']:
        y = normdist_linear(y, hp['w'], mean_normalize=hp['mean_norm'])
        if hp['b'] is not None:
            y = y + hp['b']
    # reference returns [-out, -upper, -lower] (upper/lower are None here)
    return (-y, None, None)


if __name__ == "__main__":
    key = jax.random.PRNGKey(0)
    kp, kx, ka, kb = jax.random.split(key, 4)

    # sanity-check the Pallas l-inf distance kernel against a jnp reference
    a = jax.random.normal(ka, (10, 50), jnp.float32)
    b = jax.random.normal(kb, (7, 50), jnp.float32)
    ref = jnp.max(jnp.abs(a[:, None, :] - b[None, :, :]), axis=-1)
    wp = prep_normdist_weight(b)
    got = jax.block_until_ready(linf_dist(a, wp['wt'], wp['n']))
    assert got.shape == ref.shape
    assert jnp.allclose(got, ref, atol=1e-5), "linf_dist kernel mismatch"

    # Small demo config (BasicBlock backbone); Bottleneck variants
    # (resnet50/resnet101) run through the exact same code path.
    params = make_resnet_params(kp, name='resnet18', feat_dim=128,
                                num_classes=10, in_channel=3)
    x = jax.random.normal(kx, (2, 3, 16, 16), jnp.float32)   # NCHW like PyTorch
    out, lo, up = resnet_forward(params, x)
    out = jax.block_until_ready(out)
    assert out.shape == (2, 10) and out.dtype == jnp.float32
    assert lo is None and up is None
    assert bool(jnp.all(jnp.isfinite(out)))
    print("KERNEL_OK")
</pallas_src>

<mosaic_0001>
module attributes {stable_mosaic.version = 11 : i64} {
  func.func @_linf_dist_kernel(%arg0: i32, %arg1: i32, %arg2: i32, %arg3: memref<16x56xf32, #tpu.memory_space<vmem>>, %arg4: memref<56x128xf32, #tpu.memory_space<vmem>>, %arg5: memref<16x128xf32, #tpu.memory_space<vmem>>) attributes {dimension_semantics = [#tpu.dimension_semantics<parallel>, #tpu.dimension_semantics<parallel>, #tpu.dimension_semantics<arbitrary>], iteration_bounds = array<i64: 1, 1, 1>, scalar_prefetch = 0 : i64, scratch_operands = 0 : i64, tpu.core_type = #tpu.core_type<tc>, window_params = [{transform_indices = @transform_0, window_bounds = array<i64: 16, 56>}, {transform_indices = @transform_1, window_bounds = array<i64: 56, 128>}, {transform_indices = @transform_2, window_bounds = array<i64: 16, 128>}]} {
    %c0_i32 = arith.constant 0 : i32
    %0 = arith.cmpi eq, %arg2, %c0_i32 : i32
    %1 = arith.extui %0 : i1 to i32
    %c0_i32_0 = arith.constant 0 : i32
    %2 = arith.cmpi ne, %1, %c0_i32_0 : i32
    scf.if %2 {
      %cst = arith.constant 0.000000e+00 : f32
      %397 = vector.broadcast %cst : f32 to vector<16x128xf32>
      %c0_173 = arith.constant 0 : index
      %c0_174 = arith.constant 0 : index
      %398 = vector.load %arg5[%c0_173, %c0_174] : memref<16x128xf32, #tpu.memory_space<vmem>>, vector<16x128xf32>
      tpu.vector_store %arg5[%c0_173, %c0_174], %397 {strides = array<i32>} : memref<16x128xf32, #tpu.memory_space<vmem>>, vector<16x128xf32>,
    } else {
    }
    %c0 = arith.constant 0 : index
    %c0_1 = arith.constant 0 : index
    %3 = vector.load %arg5[%c0, %c0_1] : memref<16x128xf32, #tpu.memory_space<vmem>>, vector<16x128xf32>
    %c0_2 = arith.constant 0 : index
    %c0_3 = arith.constant 0 : index
    %4 = vector.load %arg3[%c0_2, %c0_3] : memref<16x56xf32, #tpu.memory_space<vmem>>, vector<16x1xf32>
    %c0_4 = arith.constant 0 : index
    %c0_5 = arith.constant 0 : index
    %5 = vector.load %arg4[%c0_4, %c0_5] : memref<56x128xf32, #tpu.memory_space<vmem>>, vector<1x128xf32>
    %6 = vector.broadcast %4 : vector<16x1xf32> to vector<16x128xf32>
    %7 = vector.broadcast %5 : vector<1x128xf32> to vector<16x128xf32>
    %8 = arith.subf %6, %7 : vector<16x128xf32>
    %9 = math.absf %8 : vector<16x128xf32>
    %10 = arith.maximumf %3, %9 : vector<16x128xf32>
    %c0_6 = arith.constant 0 : index
    %c1 = arith.constant 1 : index
    %11 = vector.load %arg3[%c0_6, %c1] : memref<16x56xf32, #tpu.memory_space<vmem>>, vector<16x1xf32>
    %c1_7 = arith.constant 1 : index
    %c0_8 = arith.constant 0 : index
    %12 = vector.load %arg4[%c1_7, %c0_8] : memref<56x128xf32, #tpu.memory_space<vmem>>, vector<1x128xf32>
    %13 = vector.broadcast %11 : vector<16x1xf32> to vector<16x128xf32>
    %14 = vector.broadcast %12 : vector<1x128xf32> to vector<16x128xf32>
    %15 = arith.subf %13, %14 : vector<16x128xf32>
    %16 = math.absf %15 : vector<16x128xf32>
    %17 = arith.maximumf %10, %16 : vector<16x128xf32>
    %c0_9 = arith.constant 0 : index
    %c2 = arith.constant 2 : index
    %18 = vector.load %arg3[%c0_9, %c2] : memref<16x56xf32, #tpu.memory_space<vmem>>, vector<16x1xf32>
    %c2_10 = arith.constant 2 : index
    %c0_11 = arith.constant 0 : index
    %19 = vector.load %arg4[%c2_10, %c0_11] : memref<56x128xf32, #tpu.memory_space<vmem>>, vector<1x128xf32>
    %20 = vector.broadcast %18 : vector<16x1xf32> to vector<16x128xf32>
    %21 = vector.broadcast %19 : vector<1x128xf32> to vector<16x128xf32>
    %22 = arith.subf %20, %21 : vector<16x128xf32>
    %23 = math.absf %22 : vector<16x128xf32>
    %24 = arith.maximumf %17, %23 : vector<16x128xf32>
    %c0_12 = arith.constant 0 : index
    %c3 = arith.constant 3 : index
    %25 = vector.load %arg3[%c0_12, %c3] : memref<16x56xf32, #tpu.memory_space<vmem>>, vector<16x1xf32>
    %c3_13 = arith.constant 3 : index
    %c0_14 = arith.constant 0 : index
    %26 = vector.load %arg4[%c3_13, %c0_14] : memref<56x128xf32, #tpu.memory_space<vmem>>, vector<1x128xf32>
    %27 = vector.broadcast %25 : vector<16x1xf32> to vector<16x128xf32>
    %28 = vector.broadcast %26 : vector<1x128xf32> to vector<16x128xf32>
    %29 = arith.subf %27, %28 : vector<16x128xf32>
    %30 = math.absf %29 : vector<16x128xf32>
    %31 = arith.maximumf %24, %30 : vector<16x128xf32>
    %c0_15 = arith.constant 0 : index
    %c4 = arith.constant 4 : index
    %32 = vector.load %arg3[%c0_15, %c4] : memref<16x56xf32, #tpu.memory_space<vmem>>, vector<16x1xf32>
    %c4_16 = arith.constant 4 : index
    %c0_17 = arith.constant 0 : index
    %33 = vector.load %arg4[%c4_16, %c0_17] : memref<56x128xf32, #tpu.memory_space<vmem>>, vector<1x128xf32>
    %34 = vector.broadcast %32 : vector<16x1xf32> to vector<16x128xf32>
    %35 = vector.broadcast %33 : vector<1x128xf32> to vector<16x128xf32>
    %36 = arith.subf %34, %35 : vector<16x128xf32>
    %37 = math.absf %36 : vector<16x128xf32>
    %38 = arith.maximumf %31, %37 : vector<16x128xf32>
    %c0_18 = arith.constant 0 : index
    %c5 = arith.constant 5 : index
    %39 = vector.load %arg3[%c0_18, %c5] : memref<16x56xf32, #tpu.memory_space<vmem>>, vector<16x1xf32>
    %c5_19 = arith.constant 5 : index
    %c0_20 = arith.constant 0 : index
    %40 = vector.load %arg4[%c5_19, %c0_20] : memref<56x128xf32, #tpu.memory_space<vmem>>, vector<1x128xf32>
    %41 = vector.broadcast %39 : vector<16x1xf32> to vector<16x128xf32>
    %42 = vector.broadcast %40 : vector<1x128xf32> to vector<16x128xf32>
    %43 = arith.subf %41, %42 : vector<16x128xf32>
    %44 = math.absf %43 : vector<16x128xf32>
    %45 = arith.maximumf %38, %44 : vector<16x128xf32>
    %c0_21 = arith.constant 0 : index
    %c6 = arith.constant 6 : index
    %46 = vector.load %arg3[%c0_21, %c6] : memref<16x56xf32, #tpu.memory_space<vmem>>, vector<16x1xf32>
    %c6_22 = arith.constant 6 : index
    %c0_23 = arith.constant 0 : index
    %47 = vector.load %arg4[%c6_22, %c0_23] : memref<56x128xf32, #tpu.memory_space<vmem>>, vector<1x128xf32>
    %48 = vector.broadcast %46 : vector<16x1xf32> to vector<16x128xf32>
    %49 = vector.broadcast %47 : vector<1x128xf32> to vector<16x128xf32>
    %50 = arith.subf %48, %49 : vector<16x128xf32>
    %51 = math.absf %50 : vector<16x128xf32>
    %52 = arith.maximumf %45, %51 : vector<16x128xf32>
    %c0_24 = arith.constant 0 : index
    %c7 = arith.constant 7 : index
    %53 = vector.load %arg3[%c0_24, %c7] : memref<16x56xf32, #tpu.memory_space<vmem>>, vector<16x1xf32>
    %c7_25 = arith.constant 7 : index
    %c0_26 = arith.constant 0 : index
    %54 = vector.load %arg4[%c7_25, %c0_26] : memref<56x128xf32, #tpu.memory_space<vmem>>, vector<1x128xf32>
    %55 = vector.broadcast %53 : vector<16x1xf32> to vector<16x128xf32>
    %56 = vector.broadcast %54 : vector<1x128xf32> to vector<16x128xf32>
    %57 = arith.subf %55, %56 : vector<16x128xf32>
    %58 = math.absf %57 : vector<16x128xf32>
    %59 = arith.maximumf %52, %58 : vector<16x128xf32>
    %c0_27 = arith.constant 0 : index
    %c8 = arith.constant 8 : index
    %60 = vector.load %arg3[%c0_27, %c8] : memref<16x56xf32, #tpu.memory_space<vmem>>, vector<16x1xf32>
    %c8_28 = arith.constant 8 : index
    %c0_29 = arith.constant 0 : index
    %61 = vector.load %arg4[%c8_28, %c0_29] : memref<56x128xf32, #tpu.memory_space<vmem>>, vector<1x128xf32>
    %62 = vector.broadcast %60 : vector<16x1xf32> to vector<16x128xf32>
    %63 = vector.broadcast %61 : vector<1x128xf32> to vector<16x128xf32>
    %64 = arith.subf %62, %63 : vector<16x128xf32>
    %65 = math.absf %64 : vector<16x128xf32>
    %66 = arith.maximumf %59, %65 : vector<16x128xf32>
    %c0_30 = arith.constant 0 : index
    %c9 = arith.constant 9 : index
    %67 = vector.load %arg3[%c0_30, %c9] : memref<16x56xf32, #tpu.memory_space<vmem>>, vector<16x1xf32>
    %c9_31 = arith.constant 9 : index
    %c0_32 = arith.constant 0 : index
    %68 = vector.load %arg4[%c9_31, %c0_32] : memref<56x128xf32, #tpu.memory_space<vmem>>, vector<1x128xf32>
    %69 = vector.broadcast %67 : vector<16x1xf32> to vector<16x128xf32>
    %70 = vector.broadcast %68 : vector<1x128xf32> to vector<16x128xf32>
    %71 = arith.subf %69, %70 : vector<16x128xf32>
    %72 = math.absf %71 : vector<16x128xf32>
    %73 = arith.maximumf %66, %72 : vector<16x128xf32>
    %c0_33 = arith.constant 0 : index
    %c10 = arith.constant 10 : index
    %74 = vector.load %arg3[%c0_33, %c10] : memref<16x56xf32, #tpu.memory_space<vmem>>, vector<16x1xf32>
    %c10_34 = arith.constant 10 : index
    %c0_35 = arith.constant 0 : index
    %75 = vector.load %arg4[%c10_34, %c0_35] : memref<56x128xf32, #tpu.memory_space<vmem>>, vector<1x128xf32>
    %76 = vector.broadcast %74 : vector<16x1xf32> to vector<16x128xf32>
    %77 = vector.broadcast %75 : vector<1x128xf32> to vector<16x128xf32>
    %78 = arith.subf %76, %77 : vector<16x128xf32>
    %79 = math.absf %78 : vector<16x128xf32>
    %80 = arith.maximumf %73, %79 : vector<16x128xf32>
    %c0_36 = arith.constant 0 : index
    %c11 = arith.constant 11 : index
    %81 = vector.load %arg3[%c0_36, %c11] : memref<16x56xf32, #tpu.memory_space<vmem>>, vector<16x1xf32>
    %c11_37 = arith.constant 11 : index
    %c0_38 = arith.constant 0 : index
    %82 = vector.load %arg4[%c11_37, %c0_38] : memref<56x128xf32, #tpu.memory_space<vmem>>, vector<1x128xf32>
    %83 = vector.broadcast %81 : vector<16x1xf32> to vector<16x128xf32>
    %84 = vector.broadcast %82 : vector<1x128xf32> to vector<16x128xf32>
    %85 = arith.subf %83, %84 : vector<16x128xf32>
    %86 = math.absf %85 : vector<16x128xf32>
    %87 = arith.maximumf %80, %86 : vector<16x128xf32>
    %c0_39 = arith.constant 0 : index
    %c12 = arith.constant 12 : index
    %88 = vector.load %arg3[%c0_39, %c12] : memref<16x56xf32, #tpu.memory_space<vmem>>, vector<16x1xf32>
    %c12_40 = arith.constant 12 : index
    %c0_41 = arith.constant 0 : index
    %89 = vector.load %arg4[%c12_40, %c0_41] : memref<56x128xf32, #tpu.memory_space<vmem>>, vector<1x128xf32>
    %90 = vector.broadcast %88 : vector<16x1xf32> to vector<16x128xf32>
    %91 = vector.broadcast %89 : vector<1x128xf32> to vector<16x128xf32>
    %92 = arith.subf %90, %91 : vector<16x128xf32>
    %93 = math.absf %92 : vector<16x128xf32>
    %94 = arith.maximumf %87, %93 : vector<16x128xf32>
    %c0_42 = arith.constant 0 : index
    %c13 = arith.constant 13 : index
    %95 = vector.load %arg3[%c0_42, %c13] : memref<16x56xf32, #tpu.memory_space<vmem>>, vector<16x1xf32>
    %c13_43 = arith.constant 13 : index
    %c0_44 = arith.constant 0 : index
    %96 = vector.load %arg4[%c13_43, %c0_44] : memref<56x128xf32, #tpu.memory_space<vmem>>, vector<1x128xf32>
    %97 = vector.broadcast %95 : vector<16x1xf32> to vector<16x128xf32>
    %98 = vector.broadcast %96 : vector<1x128xf32> to vector<16x128xf32>
    %99 = arith.subf %97, %98 : vector<16x128xf32>
    %100 = math.absf %99 : vector<16x128xf32>
    %101 = arith.maximumf %94, %100 : vector<16x128xf32>
    %c0_45 = arith.constant 0 : index
    %c14 = arith.constant 14 : index
    %102 = vector.load %arg3[%c0_45, %c14] : memref<16x56xf32, #tpu.memory_space<vmem>>, vector<16x1xf32>
    %c14_46 = arith.constant 14 : index
    %c0_47 = arith.constant 0 : index
    %103 = vector.load %arg4[%c14_46, %c0_47] : memref<56x128xf32, #tpu.memory_space<vmem>>, vector<1x128xf32>
    %104 = vector.broadcast %102 : vector<16x1xf32> to vector<16x128xf32>
    %105 = vector.broadcast %103 : vector<1x128xf32> to vector<16x128xf32>
    %106 = arith.subf %104, %105 : vector<16x128xf32>
    %107 = math.absf %106 : vector<16x128xf32>
    %108 = arith.maximumf %101, %107 : vector<16x128xf32>
    %c0_48 = arith.constant 0 : index
    %c15 = arith.constant 15 : index
    %109 = vector.load %arg3[%c0_48, %c15] : memref<16x56xf32, #tpu.memory_space<vmem>>, vector<16x1xf32>
    %c15_49 = arith.constant 15 : index
    %c0_50 = arith.constant 0 : index
    %110 = vector.load %arg4[%c15_49, %c0_50] : memref<56x128xf32, #tpu.memory_space<vmem>>, vector<1x128xf32>
    %111 = vector.broadcast %109 : vector<16x1xf32> to vector<16x128xf32>
    %112 = vector.broadcast %110 : vector<1x128xf32> to vector<16x128xf32>
    %113 = arith.subf %111, %112 : vector<16x128xf32>
    %114 = math.absf %113 : vector<16x128xf32>
    %115 = arith.maximumf %108, %114 : vector<16x128xf32>
    %c0_51 = arith.constant 0 : index
    %c16 = arith.constant 16 : index
    %116 = vector.load %arg3[%c0_51, %c16] : memref<16x56xf32, #tpu.memory_space<vmem>>, vector<16x1xf32>
    %c16_52 = arith.constant 16 : index
    %c0_53 = arith.constant 0 : index
    %117 = vector.load %arg4[%c16_52, %c0_53] : memref<56x128xf32, #tpu.memory_space<vmem>>, vector<1x128xf32>
    %118 = vector.broadcast %116 : vector<16x1xf32> to vector<16x128xf32>
    %119 = vector.broadcast %117 : vector<1x128xf32> to vector<16x128xf32>
    %120 = arith.subf %118, %119 : vector<16x128xf32>
    %121 = math.absf %120 : vector<16x128xf32>
    %122 = arith.maximumf %115, %121 : vector<16x128xf32>
    %c0_54 = arith.constant 0 : index
    %c17 = arith.constant 17 : index
    %123 = vector.load %arg3[%c0_54, %c17] : memref<16x56xf32, #tpu.memory_space<vmem>>, vector<16x1xf32>
    %c17_55 = arith.constant 17 : index
    %c0_56 = arith.constant 0 : index
    %124 = vector.load %arg4[%c17_55, %c0_56] : memref<56x128xf32, #tpu.memory_space<vmem>>, vector<1x128xf32>
    %125 = vector.broadcast %123 : vector<16x1xf32> to vector<16x128xf32>
    %126 = vector.broadcast %124 : vector<1x128xf32> to vector<16x128xf32>
    %127 = arith.subf %125, %126 : vector<16x128xf32>
    %128 = math.absf %127 : vector<16x128xf32>
    %129 = arith.maximumf %122, %128 : vector<16x128xf32>
    %c0_57 = arith.constant 0 : index
    %c18 = arith.constant 18 : index
    %130 = vector.load %arg3[%c0_57, %c18] : memref<16x56xf32, #tpu.memory_space<vmem>>, vector<16x1xf32>
    %c18_58 = arith.constant 18 : index
    %c0_59 = arith.constant 0 : index
    %131 = vector.load %arg4[%c18_58, %c0_59] : memref<56x128xf32, #tpu.memory_space<vmem>>, vector<1x128xf32>
    %132 = vector.broadcast %130 : vector<16x1xf32> to vector<16x128xf32>
    %133 = vector.broadcast %131 : vector<1x128xf32> to vector<16x128xf32>
    %134 = arith.subf %132, %133 : vector<16x128xf32>
    %135 = math.absf %134 : vector<16x128xf32>
    %136 = arith.maximumf %129, %135 : vector<16x128xf32>
    %c0_60 = arith.constant 0 : index
    %c19 = arith.constant 19 : index
    %137 = vector.load %arg3[%c0_60, %c19] : memref<16x56xf32, #tpu.memory_space<vmem>>, vector<16x1xf32>
    %c19_61 = arith.constant 19 : index
    %c0_62 = arith.constant 0 : index
    %138 = vector.load %arg4[%c19_61, %c0_62] : memref<56x128xf32, #tpu.memory_space<vmem>>, vector<1x128xf32>
    %139 = vector.broadcast %137 : vector<16x1xf32> to vector<16x128xf32>
    %140 = vector.broadcast %138 : vector<1x128xf32> to vector<16x128xf32>
    %141 = arith.subf %139, %140 : vector<16x128xf32>
    %142 = math.absf %141 : vector<16x128xf32>
    %143 = arith.maximumf %136, %142 : vector<16x128xf32>
    %c0_63 = arith.constant 0 : index
    %c20 = arith.constant 20 : index
    %144 = vector.load %arg3[%c0_63, %c20] : memref<16x56xf32, #tpu.memory_space<vmem>>, vector<16x1xf32>
    %c20_64 = arith.constant 20 : index
    %c0_65 = arith.constant 0 : index
    %145 = vector.load %arg4[%c20_64, %c0_65] : memref<56x128xf32, #tpu.memory_space<vmem>>, vector<1x128xf32>
    %146 = vector.broadcast %144 : vector<16x1xf32> to vector<16x128xf32>
    %147 = vector.broadcast %145 : vector<1x128xf32> to vector<16x128xf32>
    %148 = arith.subf %146, %147 : vector<16x128xf32>
    %149 = math.absf %148 : vector<16x128xf32>
    %150 = arith.maximumf %143, %149 : vector<16x128xf32>
    %c0_66 = arith.constant 0 : index
    %c21 = arith.constant 21 : index
    %151 = vector.load %arg3[%c0_66, %c21] : memref<16x56xf32, #tpu.memory_space<vmem>>, vector<16x1xf32>
    %c21_67 = arith.constant 21 : index
    %c0_68 = arith.constant 0 : index
    %152 = vector.load %arg4[%c21_67, %c0_68] : memref<56x128xf32, #tpu.memory_space<vmem>>, vector<1x128xf32>
    %153 = vector.broadcast %151 : vector<16x1xf32> to vector<16x128xf32>
    %154 = vector.broadcast %152 : vector<1x128xf32> to vector<16x128xf32>
    %155 = arith.subf %153, %154 : vector<16x128xf32>
    %156 = math.absf %155 : vector<16x128xf32>
    %157 = arith.maximumf %150, %156 : vector<16x128xf32>
    %c0_69 = arith.constant 0 : index
    %c22 = arith.constant 22 : index
    %158 = vector.load %arg3[%c0_69, %c22] : memref<16x56xf32, #tpu.memory_space<vmem>>, vector<16x1xf32>
    %c22_70 = arith.constant 22 : index
    %c0_71 = arith.constant 0 : index
    %159 = vector.load %arg4[%c22_70, %c0_71] : memref<56x128xf32, #tpu.memory_space<vmem>>, vector<1x128xf32>
    %160 = vector.broadcast %158 : vector<16x1xf32> to vector<16x128xf32>
    %161 = vector.broadcast %159 : vector<1x128xf32> to vector<16x128xf32>
    %162 = arith.subf %160, %161 : vector<16x128xf32>
    %163 = math.absf %162 : vector<16x128xf32>
    %164 = arith.maximumf %157, %163 : vector<16x128xf32>
    %c0_72 = arith.constant 0 : index
    %c23 = arith.constant 23 : index
    %165 = vector.load %arg3[%c0_72, %c23] : memref<16x56xf32, #tpu.memory_space<vmem>>, vector<16x1xf32>
    %c23_73 = arith.constant 23 : index
    %c0_74 = arith.constant 0 : index
    %166 = vector.load %arg4[%c23_73, %c0_74] : memref<56x128xf32, #tpu.memory_space<vmem>>, vector<1x128xf32>
    %167 = vector.broadcast %165 : vector<16x1xf32> to vector<16x128xf32>
    %168 = vector.broadcast %166 : vector<1x128xf32> to vector<16x128xf32>
    %169 = arith.subf %167, %168 : vector<16x128xf32>
    %170 = math.absf %169 : vector<16x128xf32>
    %171 = arith.maximumf %164, %170 : vector<16x128xf32>
    %c0_75 = arith.constant 0 : index
    %c24 = arith.constant 24 : index
    %172 = vector.load %arg3[%c0_75, %c24] : memref<16x56xf32, #tpu.memory_space<vmem>>, vector<16x1xf32>
    %c24_76 = arith.constant 24 : index
    %c0_77 = arith.constant 0 : index
    %173 = vector.load %arg4[%c24_76, %c0_77] : memref<56x128xf32, #tpu.memory_space<vmem>>, vector<1x128xf32>
    %174 = vector.broadcast %172 : vector<16x1xf32> to vector<16x128xf32>
    %175 = vector.broadcast %173 : vector<1x128xf32> to vector<16x128xf32>
    %176 = arith.subf %174, %175 : vector<16x128xf32>
    %177 = math.absf %176 : vector<16x128xf32>
    %178 = arith.maximumf %171, %177 : vector<16x128xf32>
    %c0_78 = arith.constant 0 : index
    %c25 = arith.constant 25 : index
    %179 = vector.load %arg3[%c0_78, %c25] : memref<16x56xf32, #tpu.memory_space<vmem>>, vector<16x1xf32>
    %c25_79 = arith.constant 25 : index
    %c0_80 = arith.constant 0 : index
    %180 = vector.load %arg4[%c25_79, %c0_80] : memref<56x128xf32, #tpu.memory_space<vmem>>, vector<1x128xf32>
    %181 = vector.broadcast %179 : vector<16x1xf32> to vector<16x128xf32>
    %182 = vector.broadcast %180 : vector<1x128xf32> to vector<16x128xf32>
    %183 = arith.subf %181, %182 : vector<16x128xf32>
    %184 = math.absf %183 : vector<16x128xf32>
    %185 = arith.maximumf %178, %184 : vector<16x128xf32>
    %c0_81 = arith.constant 0 : index
    %c26 = arith.constant 26 : index
    %186 = vector.load %arg3[%c0_81, %c26] : memref<16x56xf32, #tpu.memory_space<vmem>>, vector<16x1xf32>
    %c26_82 = arith.constant 26 : index
    %c0_83 = arith.constant 0 : index
    %187 = vector.load %arg4[%c26_82, %c0_83] : memref<56x128xf32, #tpu.memory_space<vmem>>, vector<1x128xf32>
    %188 = vector.broadcast %186 : vector<16x1xf32> to vector<16x128xf32>
    %189 = vector.broadcast %187 : vector<1x128xf32> to vector<16x128xf32>
    %190 = arith.subf %188, %189 : vector<16x128xf32>
    %191 = math.absf %190 : vector<16x128xf32>
    %192 = arith.maximumf %185, %191 : vector<16x128xf32>
    %c0_84 = arith.constant 0 : index
    %c27 = arith.constant 27 : index
    %193 = vector.load %arg3[%c0_84, %c27] : memref<16x56xf32, #tpu.memory_space<vmem>>, vector<16x1xf32>
    %c27_85 = arith.constant 27 : index
    %c0_86 = arith.constant 0 : index
    %194 = vector.load %arg4[%c27_85, %c0_86] : memref<56x128xf32, #tpu.memory_space<vmem>>, vector<1x128xf32>
    %195 = vector.broadcast %193 : vector<16x1xf32> to vector<16x128xf32>
    %196 = vector.broadcast %194 : vector<1x128xf32> to vector<16x128xf32>
    %197 = arith.subf %195, %196 : vector<16x128xf32>
    %198 = math.absf %197 : vector<16x128xf32>
    %199 = arith.maximumf %192, %198 : vector<16x128xf32>
    %c0_87 = arith.constant 0 : index
    %c28 = arith.constant 28 : index
    %200 = vector.load %arg3[%c0_87, %c28] : memref<16x56xf32, #tpu.memory_space<vmem>>, vector<16x1xf32>
    %c28_88 = arith.constant 28 : index
    %c0_89 = arith.constant 0 : index
    %201 = vector.load %arg4[%c28_88, %c0_89] : memref<56x128xf32, #tpu.memory_space<vmem>>, vector<1x128xf32>
    %202 = vector.broadcast %200 : vector<16x1xf32> to vector<16x128xf32>
    %203 = vector.broadcast %201 : vector<1x128xf32> to vector<16x128xf32>
    %204 = arith.subf %202, %203 : vector<16x128xf32>
    %205 = math.absf %204 : vector<16x128xf32>
    %206 = arith.maximumf %199, %205 : vector<16x128xf32>
    %c0_90 = arith.constant 0 : index
    %c29 = arith.constant 29 : index
    %207 = vector.load %arg3[%c0_90, %c29] : memref<16x56xf32, #tpu.memory_space<vmem>>, vector<16x1xf32>
    %c29_91 = arith.constant 29 : index
    %c0_92 = arith.constant 0 : index
    %208 = vector.load %arg4[%c29_91, %c0_92] : memref<56x128xf32, #tpu.memory_space<vmem>>, vector<1x128xf32>
    %209 = vector.broadcast %207 : vector<16x1xf32> to vector<16x128xf32>
    %210 = vector.broadcast %208 : vector<1x128xf32> to vector<16x128xf32>
    %211 = arith.subf %209, %210 : vector<16x128xf32>
    %212 = math.absf %211 : vector<16x128xf32>
    %213 = arith.maximumf %206, %212 : vector<16x128xf32>
    %c0_93 = arith.constant 0 : index
    %c30 = arith.constant 30 : index
    %214 = vector.load %arg3[%c0_93, %c30] : memref<16x56xf32, #tpu.memory_space<vmem>>, vector<16x1xf32>
    %c30_94 = arith.constant 30 : index
    %c0_95 = arith.constant 0 : index
    %215 = vector.load %arg4[%c30_94, %c0_95] : memref<56x128xf32, #tpu.memory_space<vmem>>, vector<1x128xf32>
    %216 = vector.broadcast %214 : vector<16x1xf32> to vector<16x128xf32>
    %217 = vector.broadcast %215 : vector<1x128xf32> to vector<16x128xf32>
    %218 = arith.subf %216, %217 : vector<16x128xf32>
    %219 = math.absf %218 : vector<16x128xf32>
    %220 = arith.maximumf %213, %219 : vector<16x128xf32>
    %c0_96 = arith.constant 0 : index
    %c31 = arith.constant 31 : index
    %221 = vector.load %arg3[%c0_96, %c31] : memref<16x56xf32, #tpu.memory_space<vmem>>, vector<16x1xf32>
    %c31_97 = arith.constant 31 : index
    %c0_98 = arith.constant 0 : index
    %222 = vector.load %arg4[%c31_97, %c0_98] : memref<56x128xf32, #tpu.memory_space<vmem>>, vector<1x128xf32>
    %223 = vector.broadcast %221 : vector<16x1xf32> to vector<16x128xf32>
    %224 = vector.broadcast %222 : vector<1x128xf32> to vector<16x128xf32>
    %225 = arith.subf %223, %224 : vector<16x128xf32>
    %226 = math.absf %225 : vector<16x128xf32>
    %227 = arith.maximumf %220, %226 : vector<16x128xf32>
    %c0_99 = arith.constant 0 : index
    %c32 = arith.constant 32 : index
    %228 = vector.load %arg3[%c0_99, %c32] : memref<16x56xf32, #tpu.memory_space<vmem>>, vector<16x1xf32>
    %c32_100 = arith.constant 32 : index
    %c0_101 = arith.constant 0 : index
    %229 = vector.load %arg4[%c32_100, %c0_101] : memref<56x128xf32, #tpu.memory_space<vmem>>, vector<1x128xf32>
    %230 = vector.broadcast %228 : vector<16x1xf32> to vector<16x128xf32>
    %231 = vector.broadcast %229 : vector<1x128xf32> to vector<16x128xf32>
    %232 = arith.subf %230, %231 : vector<16x128xf32>
    %233 = math.absf %232 : vector<16x128xf32>
    %234 = arith.maximumf %227, %233 : vector<16x128xf32>
    %c0_102 = arith.constant 0 : index
    %c33 = arith.constant 33 : index
    %235 = vector.load %arg3[%c0_102, %c33] : memref<16x56xf32, #tpu.memory_space<vmem>>, vector<16x1xf32>
    %c33_103 = arith.constant 33 : index
    %c0_104 = arith.constant 0 : index
    %236 = vector.load %arg4[%c33_103, %c0_104] : memref<56x128xf32, #tpu.memory_space<vmem>>, vector<1x128xf32>
    %237 = vector.broadcast %235 : vector<16x1xf32> to vector<16x128xf32>
    %238 = vector.broadcast %236 : vector<1x128xf32> to vector<16x128xf32>
    %239 = arith.subf %237, %238 : vector<16x128xf32>
    %240 = math.absf %239 : vector<16x128xf32>
    %241 = arith.maximumf %234, %240 : vector<16x128xf32>
    %c0_105 = arith.constant 0 : index
    %c34 = arith.constant 34 : index
    %242 = vector.load %arg3[%c0_105, %c34] : memref<16x56xf32, #tpu.memory_space<vmem>>, vector<16x1xf32>
    %c34_106 = arith.constant 34 : index
    %c0_107 = arith.constant 0 : index
    %243 = vector.load %arg4[%c34_106, %c0_107] : memref<56x128xf32, #tpu.memory_space<vmem>>, vector<1x128xf32>
    %244 = vector.broadcast %242 : vector<16x1xf32> to vector<16x128xf32>
    %245 = vector.broadcast %243 : vector<1x128xf32> to vector<16x128xf32>
    %246 = arith.subf %244, %245 : vector<16x128xf32>
    %247 = math.absf %246 : vector<16x128xf32>
    %248 = arith.maximumf %241, %247 : vector<16x128xf32>
    %c0_108 = arith.constant 0 : index
    %c35 = arith.constant 35 : index
    %249 = vector.load %arg3[%c0_108, %c35] : memref<16x56xf32, #tpu.memory_space<vmem>>, vector<16x1xf32>
    %c35_109 = arith.constant 35 : index
    %c0_110 = arith.constant 0 : index
    %250 = vector.load %arg4[%c35_109, %c0_110] : memref<56x128xf32, #tpu.memory_space<vmem>>, vector<1x128xf32>
    %251 = vector.broadcast %249 : vector<16x1xf32> to vector<16x128xf32>
    %252 = vector.broadcast %250 : vector<1x128xf32> to vector<16x128xf32>
    %253 = arith.subf %251, %252 : vector<16x128xf32>
    %254 = math.absf %253 : vector<16x128xf32>
    %255 = arith.maximumf %248, %254 : vector<16x128xf32>
    %c0_111 = arith.constant 0 : index
    %c36 = arith.constant 36 : index
    %256 = vector.load %arg3[%c0_111, %c36] : memref<16x56xf32, #tpu.memory_space<vmem>>, vector<16x1xf32>
    %c36_112 = arith.constant 36 : index
    %c0_113 = arith.constant 0 : index
    %257 = vector.load %arg4[%c36_112, %c0_113] : memref<56x128xf32, #tpu.memory_space<vmem>>, vector<1x128xf32>
    %258 = vector.broadcast %256 : vector<16x1xf32> to vector<16x128xf32>
    %259 = vector.broadcast %257 : vector<1x128xf32> to vector<16x128xf32>
    %260 = arith.subf %258, %259 : vector<16x128xf32>
    %261 = math.absf %260 : vector<16x128xf32>
    %262 = arith.maximumf %255, %261 : vector<16x128xf32>
    %c0_114 = arith.constant 0 : index
    %c37 = arith.constant 37 : index
    %263 = vector.load %arg3[%c0_114, %c37] : memref<16x56xf32, #tpu.memory_space<vmem>>, vector<16x1xf32>
    %c37_115 = arith.constant 37 : index
    %c0_116 = arith.constant 0 : index
    %264 = vector.load %arg4[%c37_115, %c0_116] : memref<56x128xf32, #tpu.memory_space<vmem>>, vector<1x128xf32>
    %265 = vector.broadcast %263 : vector<16x1xf32> to vector<16x128xf32>
    %266 = vector.broadcast %264 : vector<1x128xf32> to vector<16x128xf32>
    %267 = arith.subf %265, %266 : vector<16x128xf32>
    %268 = math.absf %267 : vector<16x128xf32>
    %269 = arith.maximumf %262, %268 : vector<16x128xf32>
    %c0_117 = arith.constant 0 : index
    %c38 = arith.constant 38 : index
    %270 = vector.load %arg3[%c0_117, %c38] : memref<16x56xf32, #tpu.memory_space<vmem>>, vector<16x1xf32>
    %c38_118 = arith.constant 38 : index
    %c0_119 = arith.constant 0 : index
    %271 = vector.load %arg4[%c38_118, %c0_119] : memref<56x128xf32, #tpu.memory_space<vmem>>, vector<1x128xf32>
    %272 = vector.broadcast %270 : vector<16x1xf32> to vector<16x128xf32>
    %273 = vector.broadcast %271 : vector<1x128xf32> to vector<16x128xf32>
    %274 = arith.subf %272, %273 : vector<16x128xf32>
    %275 = math.absf %274 : vector<16x128xf32>
    %276 = arith.maximumf %269, %275 : vector<16x128xf32>
    %c0_120 = arith.constant 0 : index
    %c39 = arith.constant 39 : index
    %277 = vector.load %arg3[%c0_120, %c39] : memref<16x56xf32, #tpu.memory_space<vmem>>, vector<16x1xf32>
    %c39_121 = arith.constant 39 : index
    %c0_122 = arith.constant 0 : index
    %278 = vector.load %arg4[%c39_121, %c0_122] : memref<56x128xf32, #tpu.memory_space<vmem>>, vector<1x128xf32>
    %279 = vector.broadcast %277 : vector<16x1xf32> to vector<16x128xf32>
    %280 = vector.broadcast %278 : vector<1x128xf32> to vector<16x128xf32>
    %281 = arith.subf %279, %280 : vector<16x128xf32>
    %282 = math.absf %281 : vector<16x128xf32>
    %283 = arith.maximumf %276, %282 : vector<16x128xf32>
    %c0_123 = arith.constant 0 : index
    %c40 = arith.constant 40 : index
    %284 = vector.load %arg3[%c0_123, %c40] : memref<16x56xf32, #tpu.memory_space<vmem>>, vector<16x1xf32>
    %c40_124 = arith.constant 40 : index
    %c0_125 = arith.constant 0 : index
    %285 = vector.load %arg4[%c40_124, %c0_125] : memref<56x128xf32, #tpu.memory_space<vmem>>, vector<1x128xf32>
    %286 = vector.broadcast %284 : vector<16x1xf32> to vector<16x128xf32>
    %287 = vector.broadcast %285 : vector<1x128xf32> to vector<16x128xf32>
    %288 = arith.subf %286, %287 : vector<16x128xf32>
    %289 = math.absf %288 : vector<16x128xf32>
    %290 = arith.maximumf %283, %289 : vector<16x128xf32>
    %c0_126 = arith.constant 0 : index
    %c41 = arith.constant 41 : index
    %291 = vector.load %arg3[%c0_126, %c41] : memref<16x56xf32, #tpu.memory_space<vmem>>, vector<16x1xf32>
    %c41_127 = arith.constant 41 : index
    %c0_128 = arith.constant 0 : index
    %292 = vector.load %arg4[%c41_127, %c0_128] : memref<56x128xf32, #tpu.memory_space<vmem>>, vector<1x128xf32>
    %293 = vector.broadcast %291 : vector<16x1xf32> to vector<16x128xf32>
    %294 = vector.broadcast %292 : vector<1x128xf32> to vector<16x128xf32>
    %295 = arith.subf %293, %294 : vector<16x128xf32>
    %296 = math.absf %295 : vector<16x128xf32>
    %297 = arith.maximumf %290, %296 : vector<16x128xf32>
    %c0_129 = arith.constant 0 : index
    %c42 = arith.constant 42 : index
    %298 = vector.load %arg3[%c0_129, %c42] : memref<16x56xf32, #tpu.memory_space<vmem>>, vector<16x1xf32>
    %c42_130 = arith.constant 42 : index
    %c0_131 = arith.constant 0 : index
    %299 = vector.load %arg4[%c42_130, %c0_131] : memref<56x128xf32, #tpu.memory_space<vmem>>, vector<1x128xf32>
    %300 = vector.broadcast %298 : vector<16x1xf32> to vector<16x128xf32>
    %301 = vector.broadcast %299 : vector<1x128xf32> to vector<16x128xf32>
    %302 = arith.subf %300, %301 : vector<16x128xf32>
    %303 = math.absf %302 : vector<16x128xf32>
    %304 = arith.maximumf %297, %303 : vector<16x128xf32>
    %c0_132 = arith.constant 0 : index
    %c43 = arith.constant 43 : index
    %305 = vector.load %arg3[%c0_132, %c43] : memref<16x56xf32, #tpu.memory_space<vmem>>, vector<16x1xf32>
    %c43_133 = arith.constant 43 : index
    %c0_134 = arith.constant 0 : index
    %306 = vector.load %arg4[%c43_133, %c0_134] : memref<56x128xf32, #tpu.memory_space<vmem>>, vector<1x128xf32>
    %307 = vector.broadcast %305 : vector<16x1xf32> to vector<16x128xf32>
    %308 = vector.broadcast %306 : vector<1x128xf32> to vector<16x128xf32>
    %309 = arith.subf %307, %308 : vector<16x128xf32>
    %310 = math.absf %309 : vector<16x128xf32>
    %311 = arith.maximumf %304, %310 : vector<16x128xf32>
    %c0_135 = arith.constant 0 : index
    %c44 = arith.constant 44 : index
    %312 = vector.load %arg3[%c0_135, %c44] : memref<16x56xf32, #tpu.memory_space<vmem>>, vector<16x1xf32>
    %c44_136 = arith.constant 44 : index
    %c0_137 = arith.constant 0 : index
    %313 = vector.load %arg4[%c44_136, %c0_137] : memref<56x128xf32, #tpu.memory_space<vmem>>, vector<1x128xf32>
    %314 = vector.broadcast %312 : vector<16x1xf32> to vector<16x128xf32>
    %315 = vector.broadcast %313 : vector<1x128xf32> to vector<16x128xf32>
    %316 = arith.subf %314, %315 : vector<16x128xf32>
    %317 = math.absf %316 : vector<16x128xf32>
    %318 = arith.maximumf %311, %317 : vector<16x128xf32>
    %c0_138 = arith.constant 0 : index
    %c45 = arith.constant 45 : index
    %319 = vector.load %arg3[%c0_138, %c45] : memref<16x56xf32, #tpu.memory_space<vmem>>, vector<16x1xf32>
    %c45_139 = arith.constant 45 : index
    %c0_140 = arith.constant 0 : index
    %320 = vector.load %arg4[%c45_139, %c0_140] : memref<56x128xf32, #tpu.memory_space<vmem>>, vector<1x128xf32>
    %321 = vector.broadcast %319 : vector<16x1xf32> to vector<16x128xf32>
    %322 = vector.broadcast %320 : vector<1x128xf32> to vector<16x128xf32>
    %323 = arith.subf %321, %322 : vector<16x128xf32>
    %324 = math.absf %323 : vector<16x128xf32>
    %325 = arith.maximumf %318, %324 : vector<16x128xf32>
    %c0_141 = arith.constant 0 : index
    %c46 = arith.constant 46 : index
    %326 = vector.load %arg3[%c0_141, %c46] : memref<16x56xf32, #tpu.memory_space<vmem>>, vector<16x1xf32>
    %c46_142 = arith.constant 46 : index
    %c0_143 = arith.constant 0 : index
    %327 = vector.load %arg4[%c46_142, %c0_143] : memref<56x128xf32, #tpu.memory_space<vmem>>, vector<1x128xf32>
    %328 = vector.broadcast %326 : vector<16x1xf32> to vector<16x128xf32>
    %329 = vector.broadcast %327 : vector<1x128xf32> to vector<16x128xf32>
    %330 = arith.subf %328, %329 : vector<16x128xf32>
    %331 = math.absf %330 : vector<16x128xf32>
    %332 = arith.maximumf %325, %331 : vector<16x128xf32>
    %c0_144 = arith.constant 0 : index
    %c47 = arith.constant 47 : index
    %333 = vector.load %arg3[%c0_144, %c47] : memref<16x56xf32, #tpu.memory_space<vmem>>, vector<16x1xf32>
    %c47_145 = arith.constant 47 : index
    %c0_146 = arith.constant 0 : index
    %334 = vector.load %arg4[%c47_145, %c0_146] : memref<56x128xf32, #tpu.memory_space<vmem>>, vector<1x128xf32>
    %335 = vector.broadcast %333 : vector<16x1xf32> to vector<16x128xf32>
    %336 = vector.broadcast %334 : vector<1x128xf32> to vector<16x128xf32>
    %337 = arith.subf %335, %336 : vector<16x128xf32>
    %338 = math.absf %337 : vector<16x128xf32>
    %339 = arith.maximumf %332, %338 : vector<16x128xf32>
    %c0_147 = arith.constant 0 : index
    %c48 = arith.constant 48 : index
    %340 = vector.load %arg3[%c0_147, %c48] : memref<16x56xf32, #tpu.memory_space<vmem>>, vector<16x1xf32>
    %c48_148 = arith.constant 48 : index
    %c0_149 = arith.constant 0 : index
    %341 = vector.load %arg4[%c48_148, %c0_149] : memref<56x128xf32, #tpu.memory_space<vmem>>, vector<1x128xf32>
    %342 = vector.broadcast %340 : vector<16x1xf32> to vector<16x128xf32>
    %343 = vector.broadcast %341 : vector<1x128xf32> to vector<16x128xf32>
    %344 = arith.subf %342, %343 : vector<16x128xf32>
    %345 = math.absf %344 : vector<16x128xf32>
    %346 = arith.maximumf %339, %345 : vector<16x128xf32>
    %c0_150 = arith.constant 0 : index
    %c49 = arith.constant 49 : index
    %347 = vector.load %arg3[%c0_150, %c49] : memref<16x56xf32, #tpu.memory_space<vmem>>, vector<16x1xf32>
    %c49_151 = arith.constant 49 : index
    %c0_152 = arith.constant 0 : index
    %348 = vector.load %arg4[%c49_151, %c0_152] : memref<56x128xf32, #tpu.memory_space<vmem>>, vector<1x128xf32>
    %349 = vector.broadcast %347 : vector<16x1xf32> to vector<16x128xf32>
    %350 = vector.broadcast %348 : vector<1x128xf32> to vector<16x128xf32>
    %351 = arith.subf %349, %350 : vector<16x128xf32>
    %352 = math.absf %351 : vector<16x128xf32>
    %353 = arith.maximumf %346, %352 : vector<16x128xf32>
    %c0_153 = arith.constant 0 : index
    %c50 = arith.constant 50 : index
    %354 = vector.load %arg3[%c0_153, %c50] : memref<16x56xf32, #tpu.memory_space<vmem>>, vector<16x1xf32>
    %c50_154 = arith.constant 50 : index
    %c0_155 = arith.constant 0 : index
    %355 = vector.load %arg4[%c50_154, %c0_155] : memref<56x128xf32, #tpu.memory_space<vmem>>, vector<1x128xf32>
    %356 = vector.broadcast %354 : vector<16x1xf32> to vector<16x128xf32>
    %357 = vector.broadcast %355 : vector<1x128xf32> to vector<16x128xf32>
    %358 = arith.subf %356, %357 : vector<16x128xf32>
    %359 = math.absf %358 : vector<16x128xf32>
    %360 = arith.maximumf %353, %359 : vector<16x128xf32>
    %c0_156 = arith.constant 0 : index
    %c51 = arith.constant 51 : index
    %361 = vector.load %arg3[%c0_156, %c51] : memref<16x56xf32, #tpu.memory_space<vmem>>, vector<16x1xf32>
    %c51_157 = arith.constant 51 : index
    %c0_158 = arith.constant 0 : index
    %362 = vector.load %arg4[%c51_157, %c0_158] : memref<56x128xf32, #tpu.memory_space<vmem>>, vector<1x128xf32>
    %363 = vector.broadcast %361 : vector<16x1xf32> to vector<16x128xf32>
    %364 = vector.broadcast %362 : vector<1x128xf32> to vector<16x128xf32>
    %365 = arith.subf %363, %364 : vector<16x128xf32>
    %366 = math.absf %365 : vector<16x128xf32>
    %367 = arith.maximumf %360, %366 : vector<16x128xf32>
    %c0_159 = arith.constant 0 : index
    %c52 = arith.constant 52 : index
    %368 = vector.load %arg3[%c0_159, %c52] : memref<16x56xf32, #tpu.memory_space<vmem>>, vector<16x1xf32>
    %c52_160 = arith.constant 52 : index
    %c0_161 = arith.constant 0 : index
    %369 = vector.load %arg4[%c52_160, %c0_161] : memref<56x128xf32, #tpu.memory_space<vmem>>, vector<1x128xf32>
    %370 = vector.broadcast %368 : vector<16x1xf32> to vector<16x128xf32>
    %371 = vector.broadcast %369 : vector<1x128xf32> to vector<16x128xf32>
    %372 = arith.subf %370, %371 : vector<16x128xf32>
    %373 = math.absf %372 : vector<16x128xf32>
    %374 = arith.maximumf %367, %373 : vector<16x128xf32>
    %c0_162 = arith.constant 0 : index
    %c53 = arith.constant 53 : index
    %375 = vector.load %arg3[%c0_162, %c53] : memref<16x56xf32, #tpu.memory_space<vmem>>, vector<16x1xf32>
    %c53_163 = arith.constant 53 : index
    %c0_164 = arith.constant 0 : index
    %376 = vector.load %arg4[%c53_163, %c0_164] : memref<56x128xf32, #tpu.memory_space<vmem>>, vector<1x128xf32>
    %377 = vector.broadcast %375 : vector<16x1xf32> to vector<16x128xf32>
    %378 = vector.broadcast %376 : vector<1x128xf32> to vector<16x128xf32>
    %379 = arith.subf %377, %378 : vector<16x128xf32>
    %380 = math.absf %379 : vector<16x128xf32>
    %381 = arith.maximumf %374, %380 : vector<16x128xf32>
    %c0_165 = arith.constant 0 : index
    %c54 = arith.constant 54 : index
    %382 = vector.load %arg3[%c0_165, %c54] : memref<16x56xf32, #tpu.memory_space<vmem>>, vector<16x1xf32>
    %c54_166 = arith.constant 54 : index
    %c0_167 = arith.constant 0 : index
    %383 = vector.load %arg4[%c54_166, %c0_167] : memref<56x128xf32, #tpu.memory_space<vmem>>, vector<1x128xf32>
    %384 = vector.broadcast %382 : vector<16x1xf32> to vector<16x128xf32>
    %385 = vector.broadcast %383 : vector<1x128xf32> to vector<16x128xf32>
    %386 = arith.subf %384, %385 : vector<16x128xf32>
    %387 = math.absf %386 : vector<16x128xf32>
    %388 = arith.maximumf %381, %387 : vector<16x128xf32>
    %c0_168 = arith.constant 0 : index
    %c55 = arith.constant 55 : index
    %389 = vector.load %arg3[%c0_168, %c55] : memref<16x56xf32, #tpu.memory_space<vmem>>, vector<16x1xf32>
    %c55_169 = arith.constant 55 : index
    %c0_170 = arith.constant 0 : index
    %390 = vector.load %arg4[%c55_169, %c0_170] : memref<56x128xf32, #tpu.memory_space<vmem>>, vector<1x128xf32>
    %391 = vector.broadcast %389 : vector<16x1xf32> to vector<16x128xf32>
    %392 = vector.broadcast %390 : vector<1x128xf32> to vector<16x128xf32>
    %393 = arith.subf %391, %392 : vector<16x128xf32>
    %394 = math.absf %393 : vector<16x128xf32>
    %395 = arith.maximumf %388, %394 : vector<16x128xf32>
    %c0_171 = arith.constant 0 : index
    %c0_172 = arith.constant 0 : index
    %396 = vector.load %arg5[%c0_171, %c0_172] : memref<16x128xf32, #tpu.memory_space<vmem>>, vector<16x128xf32>
    tpu.vector_store %arg5[%c0_171, %c0_172], %395 {strides = array<i32>} : memref<16x128xf32, #tpu.memory_space<vmem>>, vector<16x128xf32>,
    return
  }
  func.func @transform_0(%arg0: i32, %arg1: i32, %arg2: i32) -> (i32, i32) {
    %c0_i32 = arith.constant 0 : i32
    return %arg0, %arg2 : i32, i32
  }
  func.func @transform_1(%arg0: i32, %arg1: i32, %arg2: i32) -> (i32, i32) {
    %c0_i32 = arith.constant 0 : i32
    return %arg2, %arg1 : i32, i32
  }
  func.func @transform_2(%arg0: i32, %arg1: i32, %arg2: i32) -> (i32, i32) {
    %c0_i32 = arith.constant 0 : i32
    return %arg0, %arg1 : i32, i32
  }
}

</mosaic_0001>

<bundles_post_ra>
// kernel: tpu_custom_call.1
= control target key start
LH: loop header
LB: loop body
LE: loop exit
PB: predicated region body
PF: predicated region fallthrough
CT: control target
= control target key end

     0   :  { %7 = vsyncpa [#allocation3], 0  ;;  %s1540_s0 = inlined_call_operand.hbm [shape: f32[16,56], index: 0, kind: input, shape index: {}]   ;;  %s1541_s1 = inlined_call_operand.hbm [shape: f32[56,128], index: 1, kind: input, shape index: {}]   ;;  %s1542_s2 = inlined_call_operand.hbm [shape: f32[16,128], index: 2, kind: output, shape index: {}]  }
   0x1   :  { %8 = vsyncpa [#allocation6], 0 }
   0x2   :  { %9 = vsyncpa [#allocation4], 0  ;;  %s14_s11 = sshll.u32 %s1540_s0, 4  ;;  %s1281_s12 = smov [#allocation2]   ;;  %s15_s11 = int_to_ptr.hbm [resolvable:$true] %s14_s11 }
   0x3   :  { %s16_s13 = sshll.u32 %s1281_s12, 4  ;;  %s27_s16 = sshll.u32 %s1541_s1, 4  ;;  %s17_s13 = int_to_ptr.vmem [resolvable:$true] %s16_s13  ;;  %s28_s16 = int_to_ptr.hbm [resolvable:$true] %s27_s16 }
   0x4   :  { %s1282_s17 = smov 128   ;;  %s1283_s18 = smov 8  }
   0x5   :  { %22 = dma.hbm_to_vmem [thread:$0]  %s15_s11, 256, %s17_s13, [#allocation3], %s1282_s17, %s1282_s17, %s1283_s18  }
   0x6   :  { %s1284_s19 = smov [#allocation5]  }
   0x7   :  { %s29_s20 = sshll.u32 %s1284_s19, 4  ;;  %s30_s20 = int_to_ptr.vmem [resolvable:$true] %s29_s20 }
   0x8   :  { %35 = dma.hbm_to_vmem [thread:$0]  %s28_s16, 896, %s30_s20, [#allocation6], %s1282_s17, %s1282_s17, %s1283_s18  }
   0x9   :  { %1275 = dma.done.wait [#allocation3], 256  }
   0xa   :  { %1276 = vsyncadd [#allocation3], 4294967040 }
   0xb   :  { %1277 = dma.done.wait [#allocation6], 896  }
   0xc   :  { %1278 = vsyncadd [#allocation6], 4294966400  ;;  %v1285_v0 = vmov 1   ;;  %v1286_v1 = vmov 0   ;;  %v1287_v2 = vmov 2   ;;  %v1369_v3 = vld [vmem:[#allocation2] sm:$0xff] }
   0xd   :  { %1037 = vset.pattern.permute.xlu1 %v1285_v0  ;;  %1036 = vset.pattern.permute.xlu0 %v1286_v1  ;;  %v1374_v4 = vld [vmem:[#allocation2 + $0x8] sm:$0xff]  ;;  %v1288_v5 = vmov 3   ;;  %v1289_v6 = vmov 4   ;;  %v1290_v7 = vmov 5   ;;  %v1291_v8 = vmov 6   ;;  %s1341_s0 = smov [#allocation7]  }
   0xe   :  { %1038 = vset.pattern.permute.xlu2 %v1287_v2  ;;  %74 = vperm.xlu1 %1037, %v1369_v3   ;;  %v1292_v9 = vmov 8   ;;  %v1293_v10 = vmov 7   ;;  %v1294_v11 = vmov 10   ;;  %v1295_v12 = vmov 13   ;;  %v1146_v24 = vld [vmem:[#allocation5 + $0x1] ss:$0 sm:$0xff] }
   0xf   :  { %57 = vperm.xlu0 %1036, %v1369_v3   ;;  %90 = vperm.xlu2 %1038, %v1369_v3   ;;  %v1296_v13 = vmov 9   ;;  %v1297_v14 = vmov 15   ;;  %v1298_v15 = vmov 11   ;;  %v1299_v16 = vmov 12   ;;  %v1147_v25 = vld [vmem:[#allocation5] ss:$0 sm:$0xff] }
  0x10   :  { %v1300_v17 = vmov 18   ;;  %v1301_v18 = vmov 14   ;;  %v1302_v21 = vmov 20   ;;  %v1303_v22 = vmov 16   ;;  %v1145_v26 = vld [vmem:[#allocation5 + $0x2] ss:$0 sm:$0xff] }
  0x11   :  { %v1304_v31 = vmov 17   ;;  %v1305_v39 = vmov 23   ;;  %v1148_v47 = vld [vmem:[#allocation5 + $0x4] ss:$0 sm:$0xff]  ;;  %v1306_v48 = vmov 19   ;;  %s958_s1 = sshll.u32 %s1341_s0, 4  ;;  %s959_s1 = int_to_ptr.vmem [resolvable:$true] %s958_s1 }
  0x12   :  { %v1149_v51 = vld [vmem:[#allocation5 + $0x5] ss:$0 sm:$0xff]  ;;  %v1150_v52 = vld [vmem:[#allocation5 + $0x3] ss:$0 sm:$0xff]  ;;  %s960_s23 = sshll.u32 %s1542_s2, 4  ;;  %s961_s23 = int_to_ptr.hbm [resolvable:$true] %s960_s23 }
  0x16   :  { %78 = vperm.xlu1 %1037, %v1374_v4  }
  0x17   :  { %62 = vperm.xlu0 %1036, %v1374_v4   ;;  %94 = vperm.xlu2 %1038, %v1374_v4  }
  0x1e   :  { %1040 = vset.pattern.permute.xlu1 %v1288_v5 }
  0x1f   :  { %1039 = vset.pattern.permute.xlu0 %v1288_v5  ;;  %110 = vperm.xlu1 %1040, %v1374_v4  }
  0x20   :  { %106 = vperm.xlu0 %1039, %v1369_v3   ;;  %1041 = vset.pattern.permute.xlu2 %v1289_v6 }
  0x21   :  { %122 = vperm.xlu2 %1041, %v1369_v3  }
  0x27   :  { %1042 = vset.pattern.permute.xlu1 %v1289_v6 }
  0x28   :  { %1044 = vset.pattern.permute.xlu0 %v1290_v7  ;;  %126 = vperm.xlu1 %1042, %v1374_v4  }
  0x29   :  { %142 = vperm.xlu0 %1044, %v1374_v4   ;;  %1043 = vset.pattern.permute.xlu2 %v1290_v7  ;;  %v1151_v7 = vld [vmem:[#allocation5 + $0x6] ss:$0 sm:$0xff] }
  0x2a   :  { %138 = vperm.xlu2 %1043, %v1369_v3  }
  0x30   :  { %1045 = vset.pattern.permute.xlu1 %v1291_v8 }
  0x31   :  { %1049 = vset.pattern.permute.xlu0 %v1292_v9  ;;  %154 = vperm.xlu1 %1045, %v1369_v3  }
  0x32   :  { %186 = vperm.xlu0 %1049, %v1369_v3   ;;  %1046 = vset.pattern.permute.xlu2 %v1291_v8 }
  0x33   :  { %158 = vperm.xlu2 %1046, %v1374_v4  }
  0x39   :  { %1047 = vset.pattern.permute.xlu1 %v1293_v10 }
  0x3a   :  { %1054 = vset.pattern.permute.xlu0 %v1294_v11  ;;  %170 = vperm.xlu1 %1047, %v1369_v3  }
  0x3b   :  { %222 = vperm.xlu0 %1054, %v1374_v4   ;;  %1048 = vset.pattern.permute.xlu2 %v1293_v10 }
  0x3c   :  { %174 = vperm.xlu2 %1048, %v1374_v4  }
  0x42   :  { %1050 = vset.pattern.permute.xlu1 %v1292_v9  ;;  %v1152_v9 = vld [vmem:[#allocation5 + $0x7] ss:$0 sm:$0xff] }
  0x43   :  { %1059 = vset.pattern.permute.xlu0 %v1295_v12  ;;  %190 = vperm.xlu1 %1050, %v1374_v4  }
  0x44   :  { %266 = vperm.xlu0 %1059, %v1369_v3   ;;  %1051 = vset.pattern.permute.xlu2 %v1296_v13 }
  0x45   :  { %202 = vperm.xlu2 %1051, %v1369_v3  }
  0x4b   :  { %1052 = vset.pattern.permute.xlu1 %v1296_v13 }
  0x4c   :  { %206 = vperm.xlu1 %1052, %v1374_v4   ;;  %1064 = vset.pattern.permute.xlu0 %v1297_v14 }
  0x4d   :  { %1053 = vset.pattern.permute.xlu2 %v1294_v11  ;;  %302 = vperm.xlu0 %1064, %v1374_v4   ;;  %v1307_v11 = vmov 25  }
  0x4e   :  { %218 = vperm.xlu2 %1053, %v1369_v3  }
  0x54   :  { %1055 = vset.pattern.permute.xlu1 %v1298_v15 }
  0x55   :  { %234 = vperm.xlu1 %1055, %v1369_v3   ;;  %1069 = vset.pattern.permute.xlu0 %v1300_v17 }
  0x56   :  { %1056 = vset.pattern.permute.xlu2 %v1298_v15  ;;  %346 = vperm.xlu0 %1069, %v1369_v3  }
  0x57   :  { %238 = vperm.xlu2 %1056, %v1374_v4  }
  0x5d   :  { %1057 = vset.pattern.permute.xlu1 %v1299_v16 }
  0x5e   :  { %250 = vperm.xlu1 %1057, %v1369_v3   ;;  %1074 = vset.pattern.permute.xlu0 %v1302_v21 }
  0x5f   :  { %1058 = vset.pattern.permute.xlu2 %v1299_v16  ;;  %382 = vperm.xlu0 %1074, %v1374_v4  }
  0x60   :  { %254 = vperm.xlu2 %1058, %v1374_v4  }
  0x66   :  { %1060 = vset.pattern.permute.xlu1 %v1295_v12 }
  0x67   :  { %270 = vperm.xlu1 %1060, %v1374_v4   ;;  %1079 = vset.pattern.permute.xlu0 %v1305_v39 }
  0x68   :  { %1061 = vset.pattern.permute.xlu2 %v1301_v18  ;;  %426 = vperm.xlu0 %1079, %v1369_v3  }
  0x69   :  { %282 = vperm.xlu2 %1061, %v1369_v3   ;;  %v91_v19 = vpop.permute.xlu2 %90 }
  0x6a   :  { %v98_v32 = vsub.f32 %v91_v19, %v1145_v26 }
  0x6c   :  { %v100_v37 = vand.u32 2147483647, %v98_v32 }
  0x6f   :  { %1062 = vset.pattern.permute.xlu1 %v1301_v18  ;;  %v1308_v18 = vmov 21  }
  0x70   :  { %286 = vperm.xlu1 %1062, %v1374_v4   ;;  %1084 = vset.pattern.permute.xlu0 %v1307_v11 }
  0x71   :  { %1063 = vset.pattern.permute.xlu2 %v1297_v14  ;;  %v95_v20 = vpop.permute.xlu2 %94  ;;  %462 = vperm.xlu0 %1084, %v1374_v4  }
  0x72   :  { %298 = vperm.xlu2 %1063, %v1369_v3   ;;  %v99_v45 = vsub.f32 %v95_v20, %v1145_v26 }
  0x74   :  { %v101_v53 = vand.u32 2147483647, %v99_v45 }
  0x78   :  { %1065 = vset.pattern.permute.xlu1 %v1303_v22 }
  0x79   :  { %314 = vperm.xlu1 %1065, %v1369_v3  }
  0x7a   :  { %1066 = vset.pattern.permute.xlu2 %v1303_v22 }
  0x7b   :  { %318 = vperm.xlu2 %1066, %v1374_v4   ;;  %v123_v23 = vpop.permute.xlu2 %122 }
  0x7c   :  { %v130_v56 = vsub.f32 %v123_v23, %v1148_v47 }
  0x7e   :  { %v132_v63 = vand.u32 2147483647, %v130_v56 }
  0x80   :  { %v75_v27 = vpop.permute.xlu1 %74 }
  0x81   :  { %v58_v28 = vpop.permute.xlu0 %57  ;;  %v82_v29 = vsub.f32 %v75_v27, %v1146_v24  ;;  %1067 = vset.pattern.permute.xlu1 %v1304_v31 }
  0x82   :  { %v66_v30 = vsub.f32 %v58_v28, %v1147_v25  ;;  %330 = vperm.xlu1 %1067, %v1369_v3  }
  0x83   :  { %1068 = vset.pattern.permute.xlu2 %v1304_v31  ;;  %v84_v34 = vand.u32 2147483647, %v82_v29  ;;  %v1309_v31 = vmov 22  }
  0x84   :  { %v68_v33 = vand.u32 2147483647, %v66_v30  ;;  %334 = vperm.xlu2 %1068, %v1374_v4   ;;  %v139_v36 = vpop.permute.xlu2 %138 }
  0x85   :  { %v146_v60 = vsub.f32 %v139_v36, %v1149_v51  ;;  %v1153_v36 = vld [vmem:[#allocation5 + $0x9] ss:$0 sm:$0xff] }
  0x86   :  { %v70_v35 = vmax.f32 %v68_v33, 0.0  ;;  %v1154_v33 = vld [vmem:[#allocation5 + $0x8] ss:$0 sm:$0xff] }
  0x87   :  { %v148_v2 = vand.u32 2147483647, %v146_v60  ;;  %v1156_v60 = vld [vmem:[#allocation5 + $0xb] ss:$0 sm:$0xff] }
  0x88   :  { %v86_v38 = vmax.f32 %v70_v35, %v84_v34  ;;  %v79_v40 = vpop.permute.xlu1 %78 }
  0x89   :  { %v63_v41 = vpop.permute.xlu0 %62  ;;  %v83_v43 = vsub.f32 %v79_v40, %v1146_v24  ;;  %v1310_v40 = vmov 28  }
  0x8a   :  { %v102_v42 = vmax.f32 %v86_v38, %v100_v37  ;;  %v67_v44 = vsub.f32 %v63_v41, %v1147_v25  ;;  %1070 = vset.pattern.permute.xlu1 %v1300_v17  ;;  %v1155_v38 = vld [vmem:[#allocation5 + $0xa] ss:$0 sm:$0xff]  ;;  %1089 = vset.pattern.permute.xlu0 %v1310_v40 }
  0x8b   :  { %350 = vperm.xlu1 %1070, %v1374_v4   ;;  %v85_v49 = vand.u32 2147483647, %v83_v43  ;;  %506 = vperm.xlu0 %1089, %v1369_v3  }
  0x8c   :  { %v69_v46 = vand.u32 2147483647, %v67_v44  ;;  %1071 = vset.pattern.permute.xlu2 %v1306_v48 }
  0x8d   :  { %362 = vperm.xlu2 %1071, %v1369_v3   ;;  %v159_v55 = vpop.permute.xlu2 %158 }
  0x8e   :  { %v71_v50 = vmax.f32 %v69_v46, 0.0  ;;  %v163_v15 = vsub.f32 %v159_v55, %v1151_v7 }
  0x90   :  { %v87_v54 = vmax.f32 %v71_v50, %v85_v49  ;;  %v165_v22 = vand.u32 2147483647, %v163_v15 }
  0x91   :  { %v111_v58 = vpop.permute.xlu1 %110 }
  0x92   :  { %v103_v57 = vmax.f32 %v87_v54, %v101_v53  ;;  %v107_v59 = vpop.permute.xlu0 %106  ;;  %v115_v61 = vsub.f32 %v111_v58, %v1150_v52 }
  0x93   :  { %v114_v62 = vsub.f32 %v107_v59, %v1150_v52  ;;  %1072 = vset.pattern.permute.xlu1 %v1306_v48  ;;  %v1311_v48 = vmov 24  }
  0x94   :  { %v117_v0 = vand.u32 2147483647, %v115_v61  ;;  %366 = vperm.xlu1 %1072, %v1374_v4  }
  0x95   :  { %v116_v1 = vand.u32 2147483647, %v114_v62  ;;  %1073 = vset.pattern.permute.xlu2 %v1302_v21  ;;  %v1157_v62 = vld [vmem:[#allocation5 + $0xc] ss:$0 sm:$0xff] }
  0x96   :  { %v119_v5 = vmax.f32 %v103_v57, %v117_v0  ;;  %378 = vperm.xlu2 %1073, %v1369_v3   ;;  %v175_v10 = vpop.permute.xlu2 %174 }
  0x97   :  { %v118_v6 = vmax.f32 %v102_v42, %v116_v1  ;;  %v179_v21 = vsub.f32 %v175_v10, %v1152_v9 }
  0x99   :  { %v134_v8 = vmax.f32 %v118_v6, %v132_v63  ;;  %v181_v25 = vand.u32 2147483647, %v179_v21  ;;  %v1312_v63 = vmov 30   ;;  %v1313_v6 = vmov 26   ;;  %v1159_v21 = vld [vmem:[#allocation5 + $0xd] ss:$0 sm:$0xff] }
  0x9a   :  { %v127_v13 = vpop.permute.xlu1 %126  ;;  %1094 = vset.pattern.permute.xlu0 %v1312_v63 }
  0x9b   :  { %v150_v12 = vmax.f32 %v134_v8, %v148_v2  ;;  %v143_v14 = vpop.permute.xlu0 %142  ;;  %v131_v16 = vsub.f32 %v127_v13, %v1148_v47  ;;  %542 = vperm.xlu0 %1094, %v1374_v4  }
  0x9c   :  { %v147_v17 = vsub.f32 %v143_v14, %v1149_v51  ;;  %1075 = vset.pattern.permute.xlu1 %v1308_v18 }
  0x9d   :  { %v133_v19 = vand.u32 2147483647, %v131_v16  ;;  %394 = vperm.xlu1 %1075, %v1369_v3  }
  0x9e   :  { %v149_v20 = vand.u32 2147483647, %v147_v17  ;;  %1076 = vset.pattern.permute.xlu2 %v1308_v18 }
  0x9f   :  { %v135_v23 = vmax.f32 %v119_v5, %v133_v19  ;;  %398 = vperm.xlu2 %1076, %v1374_v4   ;;  %v203_v26 = vpop.permute.xlu2 %202  ;;  %v1314_v19 = vmov 27  }
  0xa0   :  { %v210_v43 = vsub.f32 %v203_v26, %v1153_v36  ;;  %v1160_v26 = vld [vmem:[#allocation5 + $0xf] ss:$0 sm:$0xff] }
  0xa1   :  { %v151_v24 = vmax.f32 %v135_v23, %v149_v20 }
  0xa2   :  { %v212_v49 = vand.u32 2147483647, %v210_v43 }
  0xa3   :  { %v167_v27 = vmax.f32 %v151_v24, %v165_v22  ;;  %v155_v28 = vpop.permute.xlu1 %154  ;;  %v1158_v24 = vld [vmem:[#allocation5 + $0xe] ss:$0 sm:$0xff] }
  0xa4   :  { %v162_v29 = vsub.f32 %v155_v28, %v1151_v7  ;;  %v187_v35 = vpop.permute.xlu0 %186 }
  0xa5   :  { %v1421_v30 = vmax.f32 %v167_v27, %v181_v25  ;;  %1077 = vset.pattern.permute.xlu1 %v1309_v31  ;;  %v194_v37 = vsub.f32 %v187_v35, %v1154_v33  ;;  %v1315_v27 = vmov 33   ;;  %v1316_v35 = vmov 29  }
  0xa6   :  { %v164_v32 = vand.u32 2147483647, %v162_v29  ;;  %410 = vperm.xlu1 %1077, %v1369_v3   ;;  %1099 = vset.pattern.permute.xlu0 %v1315_v27 }
  0xa7   :  { %1078 = vset.pattern.permute.xlu2 %v1309_v31  ;;  %v196_v46 = vand.u32 2147483647, %v194_v37  ;;  %586 = vperm.xlu0 %1099, %v1369_v3  }
  0xa8   :  { %v166_v34 = vmax.f32 %v150_v12, %v164_v32  ;;  %414 = vperm.xlu2 %1078, %v1374_v4   ;;  %v219_v42 = vpop.permute.xlu2 %218 }
  0xa9   :  { %v226_v47 = vsub.f32 %v219_v42, %v1155_v38 }
  0xab   :  { %v228_v52 = vand.u32 2147483647, %v226_v47 }
  0xac   :  { %v171_v41 = vpop.permute.xlu1 %170 }
  0xad   :  { %v178_v44 = vsub.f32 %v171_v41, %v1152_v9  ;;  %v223_v59 = vpop.permute.xlu0 %222 }
  0xae   :  { %1080 = vset.pattern.permute.xlu1 %v1305_v39  ;;  %v227_v61 = vsub.f32 %v223_v59, %v1155_v38 }
  0xaf   :  { %v180_v45 = vand.u32 2147483647, %v178_v44  ;;  %430 = vperm.xlu1 %1080, %v1374_v4  }
  0xb0   :  { %1081 = vset.pattern.permute.xlu2 %v1311_v48  ;;  %v229_v8 = vand.u32 2147483647, %v227_v61 }
  0xb1   :  { %v182_v50 = vmax.f32 %v166_v34, %v180_v45  ;;  %442 = vperm.xlu2 %1081, %v1369_v3   ;;  %v239_v53 = vpop.permute.xlu2 %238 }
  0xb2   :  { %v243_v2 = vsub.f32 %v239_v53, %v1156_v60 }
  0xb3   :  { %v198_v51 = vmax.f32 %v182_v50, %v196_v46 }
  0xb4   :  { %v245_v10 = vand.u32 2147483647, %v243_v2 }
  0xb5   :  { %v214_v54 = vmax.f32 %v198_v51, %v212_v49  ;;  %v191_v55 = vpop.permute.xlu1 %190  ;;  %v1161_v49 = vld [vmem:[#allocation5 + $0x10] ss:$0 sm:$0xff]  ;;  %v1162_v51 = vld [vmem:[#allocation5 + $0x11] ss:$0 sm:$0xff] }
  0xb6   :  { %v195_v56 = vsub.f32 %v191_v55, %v1154_v33  ;;  %v267_v23 = vpop.permute.xlu0 %266 }
  0xb7   :  { %v230_v57 = vmax.f32 %v214_v54, %v228_v52  ;;  %1082 = vset.pattern.permute.xlu1 %v1311_v48  ;;  %v274_v25 = vsub.f32 %v267_v23, %v1159_v21  ;;  %v1317_v52 = vmov 35   ;;  %v1321_v23 = vmov 34  }
  0xb8   :  { %v197_v39 = vand.u32 2147483647, %v195_v56  ;;  %446 = vperm.xlu1 %1082, %v1374_v4   ;;  %1104 = vset.pattern.permute.xlu0 %v1317_v52 }
  0xb9   :  { %1083 = vset.pattern.permute.xlu2 %v1307_v11  ;;  %v276_v33 = vand.u32 2147483647, %v274_v25  ;;  %622 = vperm.xlu0 %1104, %v1374_v4  }
  0xba   :  { %v199_v58 = vmax.f32 %v1421_v30, %v197_v39  ;;  %458 = vperm.xlu2 %1083, %v1369_v3   ;;  %v255_v1 = vpop.permute.xlu2 %254 }
  0xbb   :  { %v259_v9 = vsub.f32 %v255_v1, %v1157_v62 }
  0xbd   :  { %v261_v13 = vand.u32 2147483647, %v259_v9  ;;  %v1164_v9 = vld [vmem:[#allocation5 + $0x12] ss:$0 sm:$0xff] }
  0xbe   :  { %v207_v0 = vpop.permute.xlu1 %206 }
  0xbf   :  { %v211_v5 = vsub.f32 %v207_v0, %v1153_v36  ;;  %v303_v48 = vpop.permute.xlu0 %302 }
  0xc0   :  { %1085 = vset.pattern.permute.xlu1 %v1313_v6  ;;  %v307_v50 = vsub.f32 %v303_v48, %v1160_v26 }
  0xc1   :  { %v213_v7 = vand.u32 2147483647, %v211_v5  ;;  %474 = vperm.xlu1 %1085, %v1369_v3  }
  0xc2   :  { %1086 = vset.pattern.permute.xlu2 %v1313_v6 }
  0xc3   :  { %v215_v11 = vmax.f32 %v199_v58, %v213_v7  ;;  %478 = vperm.xlu2 %1086, %v1374_v4   ;;  %v283_v14 = vpop.permute.xlu2 %282  ;;  %v309_v58 = vand.u32 2147483647, %v307_v50  ;;  %v1319_v7 = vmov 32  }
  0xc4   :  { %v290_v30 = vsub.f32 %v283_v14, %v1158_v24  ;;  %v1165_v14 = vld [vmem:[#allocation5 + $0x14] ss:$0 sm:$0xff] }
  0xc5   :  { %v231_v12 = vmax.f32 %v215_v11, %v229_v8 }
  0xc6   :  { %v292_v36 = vand.u32 2147483647, %v290_v30 }
  0xc7   :  { %v247_v15 = vmax.f32 %v231_v12, %v245_v10  ;;  %v235_v16 = vpop.permute.xlu1 %234  ;;  %v1163_v12 = vld [vmem:[#allocation5 + $0x13] ss:$0 sm:$0xff] }
  0xc8   :  { %v242_v17 = vsub.f32 %v235_v16, %v1156_v60  ;;  %v347_v11 = vpop.permute.xlu0 %346 }
  0xc9   :  { %v263_v18 = vmax.f32 %v247_v15, %v261_v13  ;;  %1087 = vset.pattern.permute.xlu1 %v1314_v19  ;;  %v354_v13 = vsub.f32 %v347_v11, %v1164_v9  ;;  %v1320_v15 = vmov 38   ;;  %v1326_v11 = vmov 39  }
  0xca   :  { %v244_v20 = vand.u32 2147483647, %v242_v17  ;;  %490 = vperm.xlu1 %1087, %v1369_v3   ;;  %1109 = vset.pattern.permute.xlu0 %v1320_v15 }
  0xcb   :  { %1088 = vset.pattern.permute.xlu2 %v1314_v19  ;;  %666 = vperm.xlu0 %1109, %v1369_v3  }
  0xcc   :  { %v246_v22 = vmax.f32 %v230_v57, %v244_v20  ;;  %494 = vperm.xlu2 %1088, %v1374_v4   ;;  %v299_v29 = vpop.permute.xlu2 %298  ;;  %v1318_v57 = vmov 31  }
  0xcd   :  { %v306_v34 = vsub.f32 %v299_v29, %v1160_v26 }
  0xcf   :  { %v308_v41 = vand.u32 2147483647, %v306_v34 }
  0xd0   :  { %v251_v28 = vpop.permute.xlu1 %250 }
  0xd1   :  { %v258_v31 = vsub.f32 %v251_v28, %v1157_v62 }
  0xd2   :  { %1090 = vset.pattern.permute.xlu1 %v1310_v40 }
  0xd3   :  { %v260_v32 = vand.u32 2147483647, %v258_v31  ;;  %510 = vperm.xlu1 %1090, %v1374_v4  }
  0xd4   :  { %1091 = vset.pattern.permute.xlu2 %v1316_v35 }
  0xd5   :  { %v262_v37 = vmax.f32 %v246_v22, %v260_v32  ;;  %522 = vperm.xlu2 %1091, %v1369_v3   ;;  %v319_v42 = vpop.permute.xlu2 %318 }
  0xd6   :  { %v323_v55 = vsub.f32 %v319_v42, %v1161_v49 }
  0xd7   :  { %v278_v38 = vmax.f32 %v262_v37, %v276_v33 }
  0xd8   :  { %v325_v60 = vand.u32 2147483647, %v323_v55 }
  0xd9   :  { %v294_v43 = vmax.f32 %v278_v38, %v292_v36  ;;  %v271_v44 = vpop.permute.xlu1 %270  ;;  %v1166_v36 = vld [vmem:[#allocation5 + $0x15] ss:$0 sm:$0xff]  ;;  %v1167_v38 = vld [vmem:[#allocation5 + $0x16] ss:$0 sm:$0xff] }
  0xda   :  { %v275_v45 = vsub.f32 %v271_v44, %v1159_v21  ;;  %v356_v21 = vand.u32 2147483647, %v354_v13 }
  0xdb   :  { %v1444_v46 = vmax.f32 %v294_v43, %v308_v41  ;;  %1092 = vset.pattern.permute.xlu1 %v1316_v35  ;;  %v383_v35 = vpop.permute.xlu0 %382  ;;  %v1322_v41 = vmov 40  }
  0xdc   :  { %v277_v40 = vand.u32 2147483647, %v275_v45  ;;  %526 = vperm.xlu1 %1092, %v1374_v4   ;;  %v387_v37 = vsub.f32 %v383_v35, %v1165_v14  ;;  %1114 = vset.pattern.permute.xlu0 %v1322_v41 }
  0xdd   :  { %1093 = vset.pattern.permute.xlu2 %v1312_v63  ;;  %702 = vperm.xlu0 %1114, %v1374_v4  }
  0xde   :  { %v279_v47 = vmax.f32 %v263_v18, %v277_v40  ;;  %538 = vperm.xlu2 %1093, %v1369_v3   ;;  %v335_v54 = vpop.permute.xlu2 %334 }
  0xdf   :  { %v339_v59 = vsub.f32 %v335_v54, %v1162_v51 }
  0xe1   :  { %v341_v63 = vand.u32 2147483647, %v339_v59  ;;  %v1169_v59 = vld [vmem:[#allocation5 + $0x17] ss:$0 sm:$0xff] }
  0xe2   :  { %v287_v53 = vpop.permute.xlu1 %286 }
  0xe3   :  { %v291_v56 = vsub.f32 %v287_v53, %v1158_v24 }
  0xe4   :  { %1095 = vset.pattern.permute.xlu1 %v1318_v57 }
  0xe5   :  { %v293_v39 = vand.u32 2147483647, %v291_v56  ;;  %554 = vperm.xlu1 %1095, %v1369_v3  }
  0xe6   :  { %1096 = vset.pattern.permute.xlu2 %v1318_v57 }
  0xe7   :  { %v295_v61 = vmax.f32 %v279_v47, %v293_v39  ;;  %558 = vperm.xlu2 %1096, %v1374_v4   ;;  %v363_v0 = vpop.permute.xlu2 %362  ;;  %v389_v47 = vand.u32 2147483647, %v387_v37  ;;  %v1324_v39 = vmov 37  }
  0xe8   :  { %v370_v18 = vsub.f32 %v363_v0, %v1163_v12  ;;  %v1170_v0 = vld [vmem:[#allocation5 + $0x19] ss:$0 sm:$0xff] }
  0xe9   :  { %v311_v62 = vmax.f32 %v295_v61, %v309_v58  ;;  %v427_v61 = vpop.permute.xlu0 %426 }
  0xea   :  { %v372_v24 = vand.u32 2147483647, %v370_v18 }
  0xeb   :  { %v327_v1 = vmax.f32 %v311_v62, %v325_v60  ;;  %v315_v2 = vpop.permute.xlu1 %314  ;;  %v1168_v62 = vld [vmem:[#allocation5 + $0x18] ss:$0 sm:$0xff] }
  0xec   :  { %v322_v5 = vsub.f32 %v315_v2, %v1161_v49 }
  0xed   :  { %v1451_v6 = vmax.f32 %v327_v1, %v341_v63  ;;  %1097 = vset.pattern.permute.xlu1 %v1319_v7  ;;  %v434_v63 = vsub.f32 %v427_v61, %v1169_v59  ;;  %v1325_v1 = vmov 43   ;;  %v1331_v61 = vmov 44  }
  0xee   :  { %v324_v8 = vand.u32 2147483647, %v322_v5  ;;  %570 = vperm.xlu1 %1097, %v1369_v3   ;;  %1119 = vset.pattern.permute.xlu0 %v1325_v1 }
  0xef   :  { %1098 = vset.pattern.permute.xlu2 %v1319_v7  ;;  %746 = vperm.xlu0 %1119, %v1369_v3  }
  0xf0   :  { %v326_v10 = vmax.f32 %v1444_v46, %v324_v8  ;;  %574 = vperm.xlu2 %1098, %v1374_v4   ;;  %v379_v17 = vpop.permute.xlu2 %378  ;;  %v1323_v46 = vmov 36  }
  0xf1   :  { %v386_v22 = vsub.f32 %v379_v17, %v1165_v14 }
  0xf3   :  { %v388_v28 = vand.u32 2147483647, %v386_v22 }
  0xf4   :  { %v331_v16 = vpop.permute.xlu1 %330 }
  0xf5   :  { %v338_v19 = vsub.f32 %v331_v16, %v1162_v51 }
  0xf6   :  { %1100 = vset.pattern.permute.xlu1 %v1315_v27 }
  0xf7   :  { %v340_v20 = vand.u32 2147483647, %v338_v19  ;;  %590 = vperm.xlu1 %1100, %v1374_v4  }
  0xf8   :  { %1101 = vset.pattern.permute.xlu2 %v1321_v23 }
  0xf9   :  { %v342_v25 = vmax.f32 %v326_v10, %v340_v20  ;;  %602 = vperm.xlu2 %1101, %v1369_v3   ;;  %v399_v29 = vpop.permute.xlu2 %398 }
  0xfa   :  { %v403_v44 = vsub.f32 %v399_v29, %v1166_v36 }
  0xfb   :  { %v358_v26 = vmax.f32 %v342_v25, %v356_v21 }
  0xfc   :  { %v405_v49 = vand.u32 2147483647, %v403_v44 }
  0xfd   :  { %v374_v30 = vmax.f32 %v358_v26, %v372_v24  ;;  %v351_v31 = vpop.permute.xlu1 %350  ;;  %v1171_v24 = vld [vmem:[#allocation5 + $0x1a] ss:$0 sm:$0xff]  ;;  %v1172_v26 = vld [vmem:[#allocation5 + $0x1b] ss:$0 sm:$0xff] }
  0xfe   :  { %v355_v32 = vsub.f32 %v351_v31, %v1164_v9  ;;  %v436_v9 = vand.u32 2147483647, %v434_v63 }
  0xff   :  { %v390_v33 = vmax.f32 %v374_v30, %v388_v28  ;;  %1102 = vset.pattern.permute.xlu1 %v1321_v23  ;;  %v463_v23 = vpop.permute.xlu0 %462  ;;  %v1327_v28 = vmov 45  }
 0x100   :  { %v357_v27 = vand.u32 2147483647, %v355_v32  ;;  %606 = vperm.xlu1 %1102, %v1374_v4   ;;  %v467_v25 = vsub.f32 %v463_v23, %v1170_v0  ;;  %1124 = vset.pattern.permute.xlu0 %v1327_v28 }
 0x101   :  { %1103 = vset.pattern.permute.xlu2 %v1317_v52  ;;  %782 = vperm.xlu0 %1124, %v1374_v4  }
 0x102   :  { %v359_v34 = vmax.f32 %v1451_v6, %v357_v27  ;;  %618 = vperm.xlu2 %1103, %v1369_v3   ;;  %v415_v43 = vpop.permute.xlu2 %414 }
 0x103   :  { %v419_v48 = vsub.f32 %v415_v43, %v1167_v38 }
 0x105   :  { %v421_v52 = vand.u32 2147483647, %v419_v48  ;;  %v1484_v48 = vld [vmem:[#allocation2] sm:$0xff] }
 0x106   :  { %v367_v42 = vpop.permute.xlu1 %366 }
 0x107   :  { %v371_v45 = vsub.f32 %v367_v42, %v1163_v12 }
 0x108   :  { %1105 = vset.pattern.permute.xlu1 %v1323_v46 }
 0x109   :  { %v373_v40 = vand.u32 2147483647, %v371_v45  ;;  %634 = vperm.xlu1 %1105, %v1369_v3  }
 0x10a   :  { %1106 = vset.pattern.permute.xlu2 %v1323_v46 }
 0x10b   :  { %v375_v50 = vmax.f32 %v359_v34, %v373_v40  ;;  %638 = vperm.xlu2 %1106, %v1374_v4   ;;  %v443_v53 = vpop.permute.xlu2 %442  ;;  %v469_v34 = vand.u32 2147483647, %v467_v25  ;;  %v1329_v40 = vmov 42  }
 0x10c   :  { %v450_v6 = vsub.f32 %v443_v53, %v1168_v62  ;;  %v1175_v53 = vld [vmem:[#allocation5 + $0x1e] ss:$0 sm:$0xff] }
 0x10d   :  { %v391_v51 = vmax.f32 %v375_v50, %v389_v47  ;;  %v507_v50 = vpop.permute.xlu0 %506 }
 0x10e   :  { %v452_v12 = vand.u32 2147483647, %v450_v6 }
 0x10f   :  { %v407_v54 = vmax.f32 %v391_v51, %v405_v49  ;;  %v395_v55 = vpop.permute.xlu1 %394  ;;  %v1173_v51 = vld [vmem:[#allocation5 + $0x1d] ss:$0 sm:$0xff] }
 0x110   :  { %v402_v56 = vsub.f32 %v395_v55, %v1166_v36 }
 0x111   :  { %v423_v57 = vmax.f32 %v407_v54, %v421_v52  ;;  %1107 = vset.pattern.permute.xlu1 %v1324_v39  ;;  %v1330_v54 = vmov 48  }
 0x112   :  { %v404_v58 = vand.u32 2147483647, %v402_v56  ;;  %650 = vperm.xlu1 %1107, %v1369_v3   ;;  %1129 = vset.pattern.permute.xlu0 %v1330_v54 }
 0x113   :  { %1108 = vset.pattern.permute.xlu2 %v1324_v39  ;;  %826 = vperm.xlu0 %1129, %v1484_v48  }
 0x114   :  { %v406_v60 = vmax.f32 %v390_v33, %v404_v58  ;;  %654 = vperm.xlu2 %1108, %v1374_v4   ;;  %v459_v5 = vpop.permute.xlu2 %458  ;;  %v1328_v33 = vmov 41  }
 0x115   :  { %v466_v10 = vsub.f32 %v459_v5, %v1170_v0 }
 0x117   :  { %v468_v16 = vand.u32 2147483647, %v466_v10 }
 0x118   :  { %v411_v2 = vpop.permute.xlu1 %410 }
 0x119   :  { %v418_v7 = vsub.f32 %v411_v2, %v1167_v38 }
 0x11a   :  { %1110 = vset.pattern.permute.xlu1 %v1320_v15 }
 0x11b   :  { %v420_v8 = vand.u32 2147483647, %v418_v7  ;;  %670 = vperm.xlu1 %1110, %v1374_v4  }
 0x11c   :  { %1111 = vset.pattern.permute.xlu2 %v1326_v11 }
 0x11d   :  { %v422_v13 = vmax.f32 %v406_v60, %v420_v8  ;;  %682 = vperm.xlu2 %1111, %v1369_v3   ;;  %v479_v17 = vpop.permute.xlu2 %478  ;;  %v1492_v60 = vld [vmem:[#allocation2 + $0x8] sm:$0xff] }
 0x11e   :  { %v483_v31 = vsub.f32 %v479_v17, %v1171_v24 }
 0x11f   :  { %v438_v14 = vmax.f32 %v422_v13, %v436_v9 }
 0x120   :  { %v485_v36 = vand.u32 2147483647, %v483_v31 }
 0x121   :  { %v454_v18 = vmax.f32 %v438_v14, %v452_v12  ;;  %v431_v19 = vpop.permute.xlu1 %430  ;;  %v1176_v12 = vld [vmem:[#allocation5 + $0x1f] ss:$0 sm:$0xff]  ;;  %v1177_v14 = vld [vmem:[#allocation5 + $0x20] ss:$0 sm:$0xff] }
 0x122   :  { %v435_v20 = vsub.f32 %v431_v19, %v1169_v59 }
 0x123   :  { %v1474_v21 = vmax.f32 %v454_v18, %v468_v16  ;;  %1112 = vset.pattern.permute.xlu1 %v1326_v11  ;;  %v543_v11 = vpop.permute.xlu0 %542  ;;  %v1332_v16 = vmov 50  }
 0x124   :  { %v437_v15 = vand.u32 2147483647, %v435_v20  ;;  %686 = vperm.xlu1 %1112, %v1374_v4   ;;  %v547_v13 = vsub.f32 %v543_v11, %v1175_v53  ;;  %1134 = vset.pattern.permute.xlu0 %v1332_v16 }
 0x125   :  { %1113 = vset.pattern.permute.xlu2 %v1322_v41  ;;  %862 = vperm.xlu0 %1134, %v1492_v60  }
 0x126   :  { %v439_v22 = vmax.f32 %v423_v57, %v437_v15  ;;  %698 = vperm.xlu2 %1113, %v1369_v3   ;;  %v495_v30 = vpop.permute.xlu2 %494 }
 0x127   :  { %v499_v35 = vsub.f32 %v495_v30, %v1172_v26 }
 0x129   :  { %v501_v41 = vand.u32 2147483647, %v499_v35  ;;  %v1179_v35 = vld [vmem:[#allocation5 + $0x21] ss:$0 sm:$0xff] }
 0x12a   :  { %v447_v29 = vpop.permute.xlu1 %446 }
 0x12b   :  { %v451_v32 = vsub.f32 %v447_v29, %v1168_v62 }
 0x12c   :  { %1115 = vset.pattern.permute.xlu1 %v1328_v33 }
 0x12d   :  { %v453_v27 = vand.u32 2147483647, %v451_v32  ;;  %714 = vperm.xlu1 %1115, %v1369_v3   ;;  %v1174_v3 = vld [vmem:[#allocation5 + $0x1c] ss:$0 sm:$0xff] }
 0x12e   :  { %1116 = vset.pattern.permute.xlu2 %v1328_v33  ;;  %v514_v52 = vsub.f32 %v507_v50, %v1174_v3  ;;  %v1336_v50 = vmov 49  }
 0x12f   :  { %v455_v37 = vmax.f32 %v439_v22, %v453_v27  ;;  %718 = vperm.xlu2 %1116, %v1374_v4   ;;  %v523_v42 = vpop.permute.xlu2 %522  ;;  %v549_v22 = vand.u32 2147483647, %v547_v13  ;;  %v1334_v27 = vmov 47  }
 0x130   :  { %v530_v57 = vsub.f32 %v523_v42, %v1173_v51  ;;  %v516_v59 = vand.u32 2147483647, %v514_v52  ;;  %v1180_v42 = vld [vmem:[#allocation5 + $0x23] ss:$0 sm:$0xff] }
 0x131   :  { %v471_v38 = vmax.f32 %v455_v37, %v469_v34  ;;  %v587_v37 = vpop.permute.xlu0 %586 }
 0x132   :  { %v532_v62 = vand.u32 2147483647, %v530_v57 }
 0x133   :  { %v487_v43 = vmax.f32 %v471_v38, %v485_v36  ;;  %v475_v44 = vpop.permute.xlu1 %474  ;;  %v1178_v38 = vld [vmem:[#allocation5 + $0x22] ss:$0 sm:$0xff] }
 0x134   :  { %v482_v45 = vsub.f32 %v475_v44, %v1171_v24 }
 0x135   :  { %v1482_v46 = vmax.f32 %v487_v43, %v501_v41  ;;  %1117 = vset.pattern.permute.xlu1 %v1329_v40  ;;  %v594_v41 = vsub.f32 %v587_v37, %v1179_v35  ;;  %v1335_v43 = vmov 53  }
 0x136   :  { %v484_v47 = vand.u32 2147483647, %v482_v45  ;;  %730 = vperm.xlu1 %1117, %v1484_v48   ;;  %1139 = vset.pattern.permute.xlu0 %v1335_v43 }
 0x137   :  { %1118 = vset.pattern.permute.xlu2 %v1329_v40  ;;  %906 = vperm.xlu0 %1139, %v1484_v48  }
 0x138   :  { %v486_v49 = vmax.f32 %v1474_v21, %v484_v47  ;;  %734 = vperm.xlu2 %1118, %v1374_v4   ;;  %v539_v56 = vpop.permute.xlu2 %538  ;;  %v1333_v21 = vmov 46  }
 0x139   :  { %v546_v4 = vsub.f32 %v539_v56, %v1175_v53 }
 0x13b   :  { %v548_v2 = vand.u32 2147483647, %v546_v4 }
 0x13c   :  { %v491_v55 = vpop.permute.xlu1 %490 }
 0x13d   :  { %v498_v39 = vsub.f32 %v491_v55, %v1172_v26 }
 0x13e   :  { %1120 = vset.pattern.permute.xlu1 %v1325_v1 }
 0x13f   :  { %v500_v58 = vand.u32 2147483647, %v498_v39  ;;  %750 = vperm.xlu1 %1120, %v1492_v60  }
 0x140   :  { %1121 = vset.pattern.permute.xlu2 %v1331_v61 }
 0x141   :  { %v502_v63 = vmax.f32 %v486_v49, %v500_v58  ;;  %762 = vperm.xlu2 %1121, %v1484_v48   ;;  %v559_v5 = vpop.permute.xlu2 %558 }
 0x142   :  { %v563_v19 = vsub.f32 %v559_v5, %v1176_v12 }
 0x143   :  { %v518_v0 = vmax.f32 %v502_v63, %v516_v59 }
 0x144   :  { %v565_v24 = vand.u32 2147483647, %v563_v19 }
 0x145   :  { %v534_v6 = vmax.f32 %v518_v0, %v532_v62  ;;  %v511_v7 = vpop.permute.xlu1 %510  ;;  %v1181_v62 = vld [vmem:[#allocation5 + $0x24] ss:$0 sm:$0xff]  ;;  %v1182_v0 = vld [vmem:[#allocation5 + $0x25] ss:$0 sm:$0xff] }
 0x146   :  { %v515_v8 = vsub.f32 %v511_v7, %v1174_v3  ;;  %v596_v3 = vand.u32 2147483647, %v594_v41 }
 0x147   :  { %v550_v1 = vmax.f32 %v534_v6, %v548_v2  ;;  %1122 = vset.pattern.permute.xlu1 %v1331_v61  ;;  %v623_v61 = vpop.permute.xlu0 %622  ;;  %v1337_v2 = vmov 55  }
 0x148   :  { %v517_v9 = vand.u32 2147483647, %v515_v8  ;;  %766 = vperm.xlu1 %1122, %v1492_v60   ;;  %v627_v63 = vsub.f32 %v623_v61, %v1180_v42  ;;  %1144 = vset.pattern.permute.xlu0 %v1337_v2 }
 0x149   :  { %1123 = vset.pattern.permute.xlu2 %v1327_v28  ;;  %942 = vperm.xlu0 %1144, %v1492_v60  }
 0x14a   :  { %v519_v10 = vmax.f32 %v1482_v46, %v517_v9  ;;  %778 = vperm.xlu2 %1123, %v1484_v48   ;;  %v575_v18 = vpop.permute.xlu2 %574 }
 0x14b   :  { %v579_v23 = vsub.f32 %v575_v18, %v1177_v14 }
 0x14d   :  { %v581_v28 = vand.u32 2147483647, %v579_v23  ;;  %v1184_v23 = vld [vmem:[#allocation5 + $0x26] ss:$0 sm:$0xff] }
 0x14e   :  { %v527_v17 = vpop.permute.xlu1 %526 }
 0x14f   :  { %v531_v20 = vsub.f32 %v527_v17, %v1173_v51 }
 0x150   :  { %1125 = vset.pattern.permute.xlu1 %v1333_v21 }
 0x151   :  { %v533_v15 = vand.u32 2147483647, %v531_v20  ;;  %794 = vperm.xlu1 %1125, %v1484_v48  }
 0x152   :  { %1126 = vset.pattern.permute.xlu2 %v1333_v21 }
 0x153   :  { %v535_v25 = vmax.f32 %v519_v10, %v533_v15  ;;  %798 = vperm.xlu2 %1126, %v1492_v60   ;;  %v603_v29 = vpop.permute.xlu2 %602  ;;  %v629_v10 = vand.u32 2147483647, %v627_v63  ;;  %v1339_v15 = vmov 52  }
 0x154   :  { %v610_v46 = vsub.f32 %v603_v29, %v1178_v38  ;;  %v1185_v29 = vld [vmem:[#allocation5 + $0x28] ss:$0 sm:$0xff] }
 0x155   :  { %v551_v26 = vmax.f32 %v535_v25, %v549_v22  ;;  %v667_v25 = vpop.permute.xlu0 %666 }
 0x156   :  { %v612_v51 = vand.u32 2147483647, %v610_v46 }
 0x157   :  { %v567_v30 = vmax.f32 %v551_v26, %v565_v24  ;;  %v555_v31 = vpop.permute.xlu1 %554  ;;  %v1183_v26 = vld [vmem:[#allocation5 + $0x27] ss:$0 sm:$0xff] }
 0x158   :  { %v562_v32 = vsub.f32 %v555_v31, %v1176_v12 }
 0x159   :  { %v583_v33 = vmax.f32 %v567_v30, %v581_v28  ;;  %1127 = vset.pattern.permute.xlu1 %v1334_v27  ;;  %v674_v28 = vsub.f32 %v667_v25, %v1184_v23 }
 0x15a   :  { %v564_v34 = vand.u32 2147483647, %v562_v32  ;;  %810 = vperm.xlu1 %1127, %v1484_v48  }
 0x15b   :  { %1128 = vset.pattern.permute.xlu2 %v1334_v27 }
 0x15c   :  { %v566_v36 = vmax.f32 %v550_v1, %v564_v34  ;;  %814 = vperm.xlu2 %1128, %v1492_v60   ;;  %v619_v45 = vpop.permute.xlu2 %618  ;;  %v1338_v1 = vmov 51   ;;  %v676_v34 = vand.u32 2147483647, %v674_v28  ;;  %v1190_v28 = vld [vmem:[#allocation5 + $0x2d] ss:$0 sm:$0xff] }
 0x15d   :  { %v626_v49 = vsub.f32 %v619_v45, %v1180_v42 }
 0x15f   :  { %v628_v55 = vand.u32 2147483647, %v626_v49  ;;  %v703_v49 = vpop.permute.xlu0 %702 }
 0x160   :  { %v571_v44 = vpop.permute.xlu1 %570 }
 0x161   :  { %v578_v40 = vsub.f32 %v571_v44, %v1177_v14 }
 0x162   :  { %1130 = vset.pattern.permute.xlu1 %v1330_v54 }
 0x163   :  { %v580_v47 = vand.u32 2147483647, %v578_v40  ;;  %830 = vperm.xlu1 %1130, %v1492_v60  }
 0x164   :  { %1131 = vset.pattern.permute.xlu2 %v1336_v50 }
 0x165   :  { %v582_v52 = vmax.f32 %v566_v36, %v580_v47  ;;  %842 = vperm.xlu2 %1131, %v1484_v48   ;;  %v639_v56 = vpop.permute.xlu2 %638  ;;  %v1340_v36 = vmov 54  }
 0x166   :  { %v643_v7 = vsub.f32 %v639_v56, %v1181_v62 }
 0x167   :  { %v598_v53 = vmax.f32 %v582_v52, %v596_v3  ;;  %v1187_v52 = vld [vmem:[#allocation5 + $0x2a] ss:$0 sm:$0xff] }
 0x168   :  { %v645_v12 = vand.u32 2147483647, %v643_v7 }
 0x169   :  { %v614_v57 = vmax.f32 %v598_v53, %v612_v51  ;;  %v591_v39 = vpop.permute.xlu1 %590  ;;  %v707_v51 = vsub.f32 %v703_v49, %v1185_v29 }
 0x16a   :  { %v595_v58 = vsub.f32 %v591_v39, %v1179_v35 }
 0x16b   :  { %v630_v59 = vmax.f32 %v614_v57, %v628_v55  ;;  %1132 = vset.pattern.permute.xlu1 %v1336_v50  ;;  %v1186_v50 = vld [vmem:[#allocation5 + $0x29] ss:$0 sm:$0xff] }
 0x16c   :  { %v597_v54 = vand.u32 2147483647, %v595_v58  ;;  %846 = vperm.xlu1 %1132, %v1492_v60   ;;  %v709_v58 = vand.u32 2147483647, %v707_v51 }
 0x16d   :  { %1133 = vset.pattern.permute.xlu2 %v1332_v16 }
 0x16e   :  { %v599_v4 = vmax.f32 %v583_v33, %v597_v54  ;;  %858 = vperm.xlu2 %1133, %v1484_v48   ;;  %v655_v6 = vpop.permute.xlu2 %654 }
 0x16f   :  { %v659_v11 = vsub.f32 %v655_v6, %v1182_v0 }
 0x171   :  { %v661_v16 = vand.u32 2147483647, %v659_v11 }
 0x172   :  { %v607_v5 = vpop.permute.xlu1 %606 }
 0x173   :  { %v611_v8 = vsub.f32 %v607_v5, %v1178_v38 }
 0x174   :  { %1135 = vset.pattern.permute.xlu1 %v1338_v1 }
 0x175   :  { %v613_v9 = vand.u32 2147483647, %v611_v8  ;;  %874 = vperm.xlu1 %1135, %v1484_v48  }
 0x176   :  { %1136 = vset.pattern.permute.xlu2 %v1338_v1 }
 0x177   :  { %v615_v13 = vmax.f32 %v599_v4, %v613_v9  ;;  %878 = vperm.xlu2 %1136, %v1492_v60   ;;  %v683_v17 = vpop.permute.xlu2 %682 }
 0x178   :  { %v690_v32 = vsub.f32 %v683_v17, %v1183_v26  ;;  %v1189_v17 = vld [vmem:[#allocation5 + $0x2b] ss:$0 sm:$0xff] }
 0x179   :  { %v631_v14 = vmax.f32 %v615_v13, %v629_v10 }
 0x17a   :  { %v692_v37 = vand.u32 2147483647, %v690_v32 }
 0x17b   :  { %v647_v18 = vmax.f32 %v631_v14, %v645_v12  ;;  %v635_v19 = vpop.permute.xlu1 %634  ;;  %v747_v12 = vpop.permute.xlu0 %746 }
 0x17c   :  { %v642_v20 = vsub.f32 %v635_v19, %v1181_v62  ;;  %v1188_v19 = vld [vmem:[#allocation5 + $0x2c] ss:$0 sm:$0xff] }
 0x17d   :  { %v663_v21 = vmax.f32 %v647_v18, %v661_v16  ;;  %1137 = vset.pattern.permute.xlu1 %v1339_v15 }
 0x17e   :  { %v644_v22 = vand.u32 2147483647, %v642_v20  ;;  %890 = vperm.xlu1 %1137, %v1484_v48  }
 0x17f   :  { %1138 = vset.pattern.permute.xlu2 %v1339_v15 }
 0x180   :  { %v646_v24 = vmax.f32 %v630_v59, %v644_v22  ;;  %894 = vperm.xlu2 %1138, %v1492_v60   ;;  %v699_v31 = vpop.permute.xlu2 %698 }
 0x181   :  { %v706_v35 = vsub.f32 %v699_v31, %v1185_v29 }
 0x183   :  { %v708_v42 = vand.u32 2147483647, %v706_v35  ;;  %v783_v22 = vpop.permute.xlu0 %782 }
 0x184   :  { %v651_v30 = vpop.permute.xlu1 %650 }
 0x185   :  { %v658_v33 = vsub.f32 %v651_v30, %v1182_v0 }
 0x186   :  { %1140 = vset.pattern.permute.xlu1 %v1335_v43 }
 0x187   :  { %v660_v27 = vand.u32 2147483647, %v658_v33  ;;  %910 = vperm.xlu1 %1140, %v1492_v60   ;;  %v1191_v33 = vld [vmem:[#allocation5 + $0x2e] ss:$0 sm:$0xff] }
 0x188   :  { %1141 = vset.pattern.permute.xlu2 %v1340_v36 }
 0x189   :  { %v662_v38 = vmax.f32 %v646_v24, %v660_v27  ;;  %922 = vperm.xlu2 %1141, %v1484_v48   ;;  %v719_v44 = vpop.permute.xlu2 %718  ;;  %v1192_v27 = vld [vmem:[#allocation5 + $0x2f] ss:$0 sm:$0xff] }
 0x18a   :  { %v723_v56 = vsub.f32 %v719_v44, %v1186_v50 }
 0x18b   :  { %v678_v41 = vmax.f32 %v662_v38, %v676_v34  ;;  %v827_v35 = vpop.permute.xlu0 %826 }
 0x18c   :  { %v725_v54 = vand.u32 2147483647, %v723_v56 }
 0x18d   :  { %v694_v45 = vmax.f32 %v678_v41, %v692_v37  ;;  %v671_v46 = vpop.permute.xlu1 %670 }
 0x18e   :  { %v675_v40 = vsub.f32 %v671_v46, %v1184_v23 }
 0x18f   :  { %v710_v47 = vmax.f32 %v694_v45, %v708_v42  ;;  %1142 = vset.pattern.permute.xlu1 %v1340_v36  ;;  %v1194_v42 = vld [vmem:[#allocation5 + $0x30] ss:$0 sm:$0xff] }
 0x190   :  { %v677_v43 = vand.u32 2147483647, %v675_v40  ;;  %926 = vperm.xlu1 %1142, %v1492_v60  }
 0x191   :  { %1143 = vset.pattern.permute.xlu2 %v1337_v2 }
 0x192   :  { %v679_v3 = vmax.f32 %v663_v21, %v677_v43  ;;  %938 = vperm.xlu2 %1143, %v1484_v48   ;;  %v735_v55 = vpop.permute.xlu2 %734  ;;  %v754_v21 = vsub.f32 %v747_v12, %v1189_v17 }
 0x193   :  { %v739_v59 = vsub.f32 %v735_v55, %v1187_v52 }
 0x195   :  { %v741_v62 = vand.u32 2147483647, %v739_v59  ;;  %v1195_v59 = vld [vmem:[#allocation5 + $0x32] ss:$0 sm:$0xff] }
 0x196   :  { %v687_v53 = vpop.permute.xlu1 %686 }
 0x197   :  { %v691_v57 = vsub.f32 %v687_v53, %v1183_v26  ;;  %v756_v26 = vand.u32 2147483647, %v754_v21  ;;  %v863_v55 = vpop.permute.xlu0 %862  ;;  %v1197_v21 = vld [vmem:[#allocation5 + $0x34] ss:$0 sm:$0xff] }
 0x199   :  { %v693_v39 = vand.u32 2147483647, %v691_v57 }
 0x19b   :  { %v695_v4 = vmax.f32 %v679_v3, %v693_v39  ;;  %v763_v60 = vpop.permute.xlu2 %762  ;;  %v1193_v3 = vld [vmem:[#allocation5 + $0x31] ss:$0 sm:$0xff] }
 0x19c   :  { %v770_v24 = vsub.f32 %v763_v60, %v1188_v19 }
 0x19d   :  { %v711_v61 = vmax.f32 %v695_v4, %v709_v58 }
 0x19e   :  { %v772_v30 = vand.u32 2147483647, %v770_v24 }
 0x19f   :  { %v727_v63 = vmax.f32 %v711_v61, %v725_v54  ;;  %v715_v0 = vpop.permute.xlu1 %714 }
 0x1a0   :  { %v722_v11 = vsub.f32 %v715_v0, %v1186_v50  ;;  %v834_v50 = vsub.f32 %v827_v35, %v1194_v42 }
 0x1a1   :  { %v743_v2 = vmax.f32 %v727_v63, %v741_v62 }
 0x1a2   :  { %v724_v18 = vand.u32 2147483647, %v722_v11  ;;  %v836_v58 = vand.u32 2147483647, %v834_v50  ;;  %v1199_v11 = vld [vmem:[#allocation5 + $0x35] ss:$0 sm:$0xff] }
 0x1a4   :  { %v779_v48 = vpop.permute.xlu2 %778  ;;  %v726_v15 = vmax.f32 %v710_v47, %v724_v18 }
 0x1a5   :  { %v786_v32 = vsub.f32 %v779_v48, %v1190_v28  ;;  %v1196_v48 = vld [vmem:[#allocation5 + $0x33] ss:$0 sm:$0xff] }
 0x1a7   :  { %v788_v38 = vand.u32 2147483647, %v786_v32 }
 0x1a8   :  { %v731_v5 = vpop.permute.xlu1 %730 }
 0x1a9   :  { %v738_v16 = vsub.f32 %v731_v5, %v1187_v52  ;;  %v787_v52 = vsub.f32 %v783_v22, %v1190_v28  ;;  %v1200_v22 = vld [vmem:[#allocation5 + $0x37] ss:$0 sm:$0xff] }
 0x1ab   :  { %v740_v20 = vand.u32 2147483647, %v738_v16  ;;  %v789_v61 = vand.u32 2147483647, %v787_v52 }
 0x1ad   :  { %v1522_v6 = vpop.permute.xlu2 %798  ;;  %v742_v25 = vmax.f32 %v726_v15, %v740_v20 }
 0x1ae   :  { %v803_v54 = vsub.f32 %v1522_v6, %v1191_v33 }
 0x1af   :  { %v758_v31 = vmax.f32 %v742_v25, %v756_v26 }
 0x1b1   :  { %v751_v7 = vpop.permute.xlu1 %750  ;;  %v774_v37 = vmax.f32 %v758_v31, %v772_v30  ;;  %v867_v31 = vsub.f32 %v863_v55, %v1195_v59 }
 0x1b2   :  { %v755_v36 = vsub.f32 %v751_v7, %v1189_v17  ;;  %v805_v7 = vand.u32 2147483647, %v803_v54  ;;  %v1198_v17 = vld [vmem:[#allocation5 + $0x36] ss:$0 sm:$0xff] }
 0x1b3   :  { %v790_v43 = vmax.f32 %v774_v37, %v788_v38  ;;  %v869_v38 = vand.u32 2147483647, %v867_v31 }
 0x1b4   :  { %v757_v47 = vand.u32 2147483647, %v755_v36 }
 0x1b6   :  { %v1524_v1 = vpop.permute.xlu2 %814  ;;  %v759_v56 = vmax.f32 %v743_v2, %v757_v47 }
 0x1ba   :  { %v767_v8 = vpop.permute.xlu1 %766 }
 0x1bb   :  { %v771_v44 = vsub.f32 %v767_v8, %v1188_v19 }
 0x1bd   :  { %v773_v51 = vand.u32 2147483647, %v771_v44 }
 0x1bf   :  { %v843_v9 = vpop.permute.xlu2 %842  ;;  %v775_v4 = vmax.f32 %v759_v56, %v773_v51 }
 0x1c0   :  { %v850_v57 = vsub.f32 %v843_v9, %v1193_v3  ;;  %v907_v9 = vpop.permute.xlu0 %906 }
 0x1c1   :  { %v791_v8 = vmax.f32 %v775_v4, %v789_v61  ;;  %v914_v19 = vsub.f32 %v907_v9, %v1199_v11 }
 0x1c2   :  { %v852_v63 = vand.u32 2147483647, %v850_v57 }
 0x1c3   :  { %v795_v10 = vpop.permute.xlu1 %794  ;;  %v807_v6 = vmax.f32 %v791_v8, %v805_v7  ;;  %v916_v32 = vand.u32 2147483647, %v914_v19 }
 0x1c4   :  { %v802_v34 = vsub.f32 %v795_v10, %v1191_v33  ;;  %v819_v10 = vsub.f32 %v1524_v1, %v1192_v27 }
 0x1c6   :  { %v804_v40 = vand.u32 2147483647, %v802_v34  ;;  %v821_v18 = vand.u32 2147483647, %v819_v10 }
 0x1c8   :  { %v859_v14 = vpop.permute.xlu2 %858  ;;  %v806_v53 = vmax.f32 %v790_v43, %v804_v40  ;;  %v823_v30 = vmax.f32 %v807_v6, %v821_v18  ;;  %v943_v52 = vpop.permute.xlu0 %942 }
 0x1c9   :  { %v866_v5 = vsub.f32 %v859_v14, %v1195_v59  ;;  %v947_v57 = vsub.f32 %v943_v52, %v1200_v22 }
 0x1cb   :  { %v949_v4 = vand.u32 2147483647, %v947_v57 }
 0x1cc   :  { %v811_v13 = vpop.permute.xlu1 %810 }
 0x1cd   :  { %v818_v41 = vsub.f32 %v811_v13, %v1192_v27  ;;  %v868_v13 = vand.u32 2147483647, %v866_v5 }
 0x1cf   :  { %v820_v49 = vand.u32 2147483647, %v818_v41 }
 0x1d1   :  { %v1526_v23 = vpop.permute.xlu2 %878  ;;  %v822_v39 = vmax.f32 %v806_v53, %v820_v49 }
 0x1d2   :  { %v883_v41 = vsub.f32 %v1526_v23, %v1196_v48 }
 0x1d3   :  { %v838_v0 = vmax.f32 %v822_v39, %v836_v58 }
 0x1d4   :  { %v885_v43 = vand.u32 2147483647, %v883_v41 }
 0x1d5   :  { %v831_v29 = vpop.permute.xlu1 %830  ;;  %v854_v12 = vmax.f32 %v838_v0, %v852_v63 }
 0x1d6   :  { %v835_v16 = vsub.f32 %v831_v29, %v1194_v42 }
 0x1d7   :  { %v870_v25 = vmax.f32 %v854_v12, %v868_v13 }
 0x1d8   :  { %v837_v26 = vand.u32 2147483647, %v835_v16 }
 0x1da   :  { %v1528_v46 = vpop.permute.xlu2 %894  ;;  %v839_v35 = vmax.f32 %v823_v30, %v837_v26 }
 0x1db   :  { %v899_v49 = vsub.f32 %v1528_v46, %v1197_v21 }
 0x1dd   :  { %v901_v55 = vand.u32 2147483647, %v899_v49 }
 0x1de   :  { %v847_v45 = vpop.permute.xlu1 %846 }
 0x1df   :  { %v851_v20 = vsub.f32 %v847_v45, %v1193_v3 }
 0x1e1   :  { %v853_v33 = vand.u32 2147483647, %v851_v20 }
 0x1e3   :  { %v923_v62 = vpop.permute.xlu2 %922  ;;  %v855_v42 = vmax.f32 %v839_v35, %v853_v33 }
 0x1e4   :  { %v930_v28 = vsub.f32 %v923_v62, %v1198_v17 }
 0x1e5   :  { %v871_v3 = vmax.f32 %v855_v42, %v869_v38 }
 0x1e6   :  { %v932_v36 = vand.u32 2147483647, %v930_v28 }
 0x1e7   :  { %v875_v60 = vpop.permute.xlu1 %874  ;;  %v887_v53 = vmax.f32 %v871_v3, %v885_v43 }
 0x1e8   :  { %v882_v2 = vsub.f32 %v875_v60, %v1196_v48 }
 0x1e9   :  { %v903_v58 = vmax.f32 %v887_v53, %v901_v55 }
 0x1ea   :  { %v884_v15 = vand.u32 2147483647, %v882_v2 }
 0x1ec   :  { %v939_v24 = vpop.permute.xlu2 %938  ;;  %v886_v27 = vmax.f32 %v870_v25, %v884_v15 }
 0x1ed   :  { %v946_v34 = vsub.f32 %v939_v24, %v1200_v22 }
 0x1ef   :  { %v948_v45 = vand.u32 2147483647, %v946_v34 }
 0x1f0   :  { %v891_v14 = vpop.permute.xlu1 %890 }
 0x1f1   :  { %v898_v1 = vsub.f32 %v891_v14, %v1197_v21 }
 0x1f3   :  { %v900_v29 = vand.u32 2147483647, %v898_v1 }
 0x1f5   :  { %v902_v37 = vmax.f32 %v886_v27, %v900_v29 }
 0x1f7   :  { %v918_v44 = vmax.f32 %v902_v37, %v916_v32 }
 0x1f9   :  { %v934_v40 = vmax.f32 %v918_v44, %v932_v36  ;;  %v911_v47 = vpop.permute.xlu1 %910 }
 0x1fa   :  { %v915_v51 = vsub.f32 %v911_v47, %v1199_v11 }
 0x1fb   :  { %v950_v50 = vmax.f32 %v934_v40, %v948_v45 }
 0x1fc   :  { %v917_v56 = vand.u32 2147483647, %v915_v51 }
 0x1fd   :  { %952 = vst [vmem:[#allocation7] sm:$0xff] %v950_v50 }
 0x1fe   :  { %v919_v59 = vmax.f32 %v903_v58, %v917_v56 }
 0x202   :  { %v927_v39 = vpop.permute.xlu1 %926 }
 0x203   :  { %v931_v23 = vsub.f32 %v927_v39, %v1198_v17 }
 0x205   :  { %v933_v54 = vand.u32 2147483647, %v931_v23 }
 0x207   :  { %v935_v46 = vmax.f32 %v919_v59, %v933_v54 }
 0x209   :  { %v951_v61 = vmax.f32 %v935_v46, %v949_v4 }
 0x20b   :  { %953 = vst [vmem:[#allocation7 + $0x8] sm:$0xff] %v951_v61 }
 0x20c   :  { %966 = dma.vmem_to_hbm [thread:$0]  %s959_s1, 256, %s961_s23, [#allocation4], %s1282_s17, %s1282_s17, %s1283_s18  }
 0x20d   :  { %1279 = dma.done.wait [#allocation4], 256  }
 0x20e   :  { %1280 = vsyncadd [#allocation4], 4294967040 }
 0x20f   :  { %971 = vsyncpa [#allocation3], 1 }
 0x210   :  { %972 = vsyncpa [#allocation6], 1 }
 0x211   :  { %973 = vsyncpa [#allocation4], 1 }

</bundles_post_ra>
